<compile_context>
chip_gen: v6e
topology: v6e:2x2x1
jax: 0.10.0
libtpu: 0.0.40
codegen_flags: <defaults>
</compile_context>

<pallas_src>
import functools
import math

import numpy as np

import jax
import jax.numpy as jnp
from jax import lax
from jax.experimental import pallas as pl
from jax.experimental.pallas import tpu as pltpu

LANE = 128     # lane width (last dim)
SUBLANE = 8    # sublane width (second-to-last dim)


def _round_up(x, m):
    return ((x + m - 1) // m) * m


# ----------------------------------------------------------------------------
# Kernel 1: LSTM recurrence over a chunk of timesteps.
#   Gate layout in the 4*HP axis (after param prep): [i | f | o | g], each HP
#   wide and lane-aligned, so sigmoid is applied once to the first 3*HP lanes
#   and tanh once to the last HP lanes.  x@Wih + b is hoisted to the wrapper;
#   the serial chain here is only h@Whh + elementwise.
# ----------------------------------------------------------------------------
def lstm_chunk_kernel(xp_ref,     # (T_CHUNK, BP, 4*HP) x@Wih + b for this chunk
                      whh_hbm,    # (HP, 4*HP) in HBM (memory_space=pl.ANY)
                      hT_ref,     # (BP, HP) output: final hidden state
                      whh_scr,    # (HP, 4*HP) VMEM scratch (single copy of whh)
                      h_scr,      # (BP, HP) VMEM scratch, persists across grid
                      c_scr,      # (BP, HP) VMEM scratch, persists across grid
                      dma_sem,    # DMA semaphore for the one-time whh copy
                      *, HP, t_chunk, rem, unroll):
    s = pl.program_id(0)
    nprog = pl.num_programs(0)

    @pl.when(s == 0)
    def _init():
        # Copy the (grid-invariant) recurrent weight into VMEM exactly once.
        cp = pltpu.make_async_copy(whh_hbm, whh_scr, dma_sem)
        cp.start()
        cp.wait()
        h_scr[...] = jnp.zeros_like(h_scr)
        c_scr[...] = jnp.zeros_like(c_scr)

    whh = whh_scr[...]

    def run_steps(n_steps):
        def body(k, carry):
            h, c = carry
            gates = xp_ref[k] + jnp.dot(h, whh,
                                        preferred_element_type=jnp.float32)
            sig = jax.nn.sigmoid(gates[:, : 3 * HP])   # [i | f | o], one EUP pass
            g_g = jnp.tanh(gates[:, 3 * HP:])          # g, one EUP pass
            i_g = sig[:, 0 * HP: 1 * HP]
            f_g = sig[:, 1 * HP: 2 * HP]
            o_g = sig[:, 2 * HP: 3 * HP]
            c_new = f_g * c + i_g * g_g
            h_new = o_g * jnp.tanh(c_new)
            return h_new, c_new

        h, c = lax.fori_loop(0, n_steps, body,
                             (h_scr[...], c_scr[...]), unroll=unroll)
        h_scr[...] = h
        c_scr[...] = c

    if rem == t_chunk:
        # T is a multiple of the chunk size: no guards anywhere.
        run_steps(t_chunk)
    else:
        # Only the last chunk runs fewer (statically known) steps; non-last
        # chunks stay guard-free on the serial critical path.
        @pl.when(s < nprog - 1)
        def _full():
            run_steps(t_chunk)

        @pl.when(s == nprog - 1)
        def _tail():
            run_steps(rem)

    @pl.when(s == nprog - 1)
    def _emit():
        hT_ref[...] = h_scr[...]


# ----------------------------------------------------------------------------
# Kernel 2: fc3 projection of h_T, tiled over the (padded) vocab axis.
#   w3 is streamed in bf16 (memory-bound stream); accumulation stays f32.
# ----------------------------------------------------------------------------
def fc3_kernel(h_ref,      # (BP, HP)      f32
               w3_ref,     # (HP, TILE_V)  bf16
               b3_ref,     # (1, TILE_V)   f32
               out_ref):   # (BP, TILE_V)  f32
    h_bf = h_ref[...].astype(jnp.bfloat16)   # tiny; keeps MXU at native bf16 rate
    out_ref[...] = (jnp.dot(h_bf, w3_ref[...],
                            preferred_element_type=jnp.float32)
                    + b3_ref[...])


# ----------------------------------------------------------------------------
# Wrapper
# ----------------------------------------------------------------------------
@jax.jit
def lang_model_forward(token_ids, kparams):
    """token_ids: (B, T) int32 -> fc3 logits (B, V) float32."""
    whh_p = kparams["whh_p"]           # (HP, 4*HP) f32
    w3_p = kparams["w3_p"]             # (HP, VP)   bf16
    b3_p = kparams["b3_p"]             # (1, VP)    f32

    B, T = token_ids.shape
    HP = whh_p.shape[0]
    G = whh_p.shape[1]                 # 4*HP
    VP = w3_p.shape[1]
    BP = _round_up(B, SUBLANE)

    # ---- chunking over T: ~2 MiB x_proj blocks, capped at 128 steps --------
    bytes_per_step = BP * G * 4
    T_CHUNK = int(max(1, min(T, max(8, (2 << 20) // bytes_per_step), 128)))
    num_chunks = int(pl.cdiv(T, T_CHUNK))
    TP = num_chunks * T_CHUNK
    rem = T - (num_chunks - 1) * T_CHUNK        # steps in the last chunk (static)

    # Pad only the tiny int32 token array (batch -> sublane multiple,
    # T -> chunk multiple); padded timesteps are never executed (last-chunk
    # branch runs `rem` steps), padded batch rows are sliced off at the end.
    tok_p = jnp.pad(token_ids, ((0, BP - B), (0, TP - T)))
    tok_tm = tok_p.T                            # (TP, BP) time-major

    if "emb_proj_p" in kparams:
        # Small-vocab path: embedding already folded through Wih (+ bias).
        V = kparams["emb_proj_p"].shape[0]
        x_proj = jnp.take(kparams["emb_proj_p"], tok_tm, axis=0)   # (TP,BP,4HP)
    else:
        emb_table = kparams["embedding"]
        V = emb_table.shape[0]
        emb_tm = jnp.take(emb_table, tok_tm, axis=0)                # (TP,BP,E)
        x_proj = jnp.einsum("tbe,eg->tbg", emb_tm, kparams["wih_p"],
                            preferred_element_type=jnp.float32) + kparams["b_p"]

    # ---- recurrence kernel: grid over T chunks, h/c in persistent scratch --
    vmem_need = (2 * T_CHUNK * BP * G * 4    # double-buffered x_proj blocks
                 + HP * G * 4                # whh scratch (single copy)
                 + 4 * BP * HP * 4)          # h, c, hT out buffers
    vmem_limit = int(min(96 << 20, max(32 << 20, 2 * vmem_need)))

    hT = pl.pallas_call(
        functools.partial(lstm_chunk_kernel, HP=HP, t_chunk=T_CHUNK, rem=rem,
                          unroll=int(min(8, T_CHUNK))),
        out_shape=jax.ShapeDtypeStruct((BP, HP), jnp.float32),
        grid=(num_chunks,),
        in_specs=[
            pl.BlockSpec((T_CHUNK, BP, G), lambda s: (s, 0, 0)),
            pl.BlockSpec(memory_space=pl.ANY),   # whh stays in HBM; copied once
        ],
        out_specs=pl.BlockSpec((BP, HP), lambda s: (0, 0)),
        scratch_shapes=[
            pltpu.VMEM((HP, G), jnp.float32),    # whh (single VMEM copy)
            pltpu.VMEM((BP, HP), jnp.float32),   # h
            pltpu.VMEM((BP, HP), jnp.float32),   # c
            pltpu.SemaphoreType.DMA,             # whh copy semaphore
        ],
        compiler_params=pltpu.CompilerParams(
            dimension_semantics=("arbitrary",),   # sequential carry over T
            vmem_limit_bytes=vmem_limit),
    )(x_proj, whh_p)

    # ---- fc3 kernel: lane-dense V tiles, >=2 tiles feed both TCs on v7x ----
    if VP % 512 == 0 and VP >= 1024:
        TILE_V = 512
    elif VP % 256 == 0:
        TILE_V = 256
    else:
        TILE_V = VP

    logits_p = pl.pallas_call(
        fc3_kernel,
        out_shape=jax.ShapeDtypeStruct((BP, VP), jnp.float32),
        grid=(VP // TILE_V,),
        in_specs=[
            pl.BlockSpec((BP, HP), lambda j: (0, 0)),
            pl.BlockSpec((HP, TILE_V), lambda j: (0, j)),
            pl.BlockSpec((1, TILE_V), lambda j: (0, j)),
        ],
        out_specs=pl.BlockSpec((BP, TILE_V), lambda j: (0, j)),
        compiler_params=pltpu.CompilerParams(
            dimension_semantics=("parallel",)),
    )(hT, w3_p, b3_p)

    # dropout(h_T) is identity in eval mode; .squeeze() is a no-op for B>1
    # (for B==1 the PyTorch reference would drop the batch dim).
    return logits_p[:B, :V]


# ----------------------------------------------------------------------------
# Parameters (PyTorch layout) + kernel-layout preparation
# ----------------------------------------------------------------------------
def init_params(key, vocab_size, emb_size, hidden_size):
    kE, k1, k2, k3, k4, k5, k6 = jax.random.split(key, 7)
    H = hidden_size
    s = 1.0 / math.sqrt(H)
    return {
        "embedding": jax.random.normal(kE, (vocab_size, emb_size), jnp.float32),
        "w_ih": jax.random.uniform(k1, (4 * H, emb_size), jnp.float32, -s, s),
        "w_hh": jax.random.uniform(k2, (4 * H, H), jnp.float32, -s, s),
        "b_ih": jax.random.uniform(k3, (4 * H,), jnp.float32, -s, s),
        "b_hh": jax.random.uniform(k4, (4 * H,), jnp.float32, -s, s),
        "w3": jax.random.uniform(k5, (vocab_size, H), jnp.float32, -s, s),
        "b3": jax.random.uniform(k6, (vocab_size,), jnp.float32, -s, s),
    }
    # Note: fc1/fc2 of the original module are unused in forward().


def prepare_kernel_params(params, hidden_size, emb_proj_max_bytes=64 << 20):
    """Reorder LSTM gates [i,f,g,o]->[i,f,o,g], pad each gate to HP lanes,
    pad H/V-facing dims so all kernel buffers are (8,128)-aligned, store the
    fc3 weight in bf16, and (for modest vocabs) pre-fold the embedding through
    the input projection so the per-call x_proj is a pure gather."""
    H = hidden_size
    HP = _round_up(H, LANE)
    V, _E = params["embedding"].shape
    VP = _round_up(V, 512)   # multiple of TILE_V => lane-dense fc3 tiles, >=2 tiles

    def reorder_pad_rows(w):   # (4H, X) rows [i,f,g,o] -> (4*HP, X) rows [i,f,o,g]
        i_, f_, g_, o_ = (w[0 * H:1 * H], w[1 * H:2 * H],
                          w[2 * H:3 * H], w[3 * H:4 * H])
        blocks = []
        for blk in (i_, f_, o_, g_):
            pad = jnp.zeros((HP - H,) + blk.shape[1:], blk.dtype)
            blocks.append(jnp.concatenate([blk, pad], axis=0))
        return jnp.concatenate(blocks, axis=0)

    wih_p = reorder_pad_rows(params["w_ih"]).T                      # (E, 4*HP)
    whh_p = jnp.pad(reorder_pad_rows(params["w_hh"]).T,
                    ((0, HP - H), (0, 0)))                          # (HP, 4*HP)
    b_p = reorder_pad_rows(
        (params["b_ih"] + params["b_hh"])[:, None])[:, 0]           # (4*HP,)
    # fc3 is HBM-bandwidth bound on the weight stream -> keep it in bf16
    # (f32 accumulation in the kernel; small deviation vs f32/f64 reference).
    w3_p = jnp.pad(params["w3"].T,
                   ((0, HP - H), (0, VP - V))).astype(jnp.bfloat16)  # (HP, VP)
    b3_p = jnp.pad(params["b3"], (0, VP - V))[None, :]               # (1, VP)

    out = {"whh_p": whh_p, "w3_p": w3_p, "b3_p": b3_p}
    if V * 4 * HP * 4 <= emb_proj_max_bytes:
        # Fold embedding through the input projection ONCE: (V, 4*HP).
        out["emb_proj_p"] = (params["embedding"] @ wih_p
                             + b_p).astype(jnp.float32)
    else:
        out["embedding"] = params["embedding"]
        out["wih_p"] = wih_p
        out["b_p"] = b_p
    return out


if __name__ == "__main__":
    VOCAB = 50      # word2idx is empty in the reference; pick a small vocab
    EMB = 30
    HIDDEN = 10
    BATCH = 2
    SEQ = 8

    key = jax.random.PRNGKey(0)
    kparam, kx = jax.random.split(key)
    raw_params = init_params(kparam, VOCAB, EMB, HIDDEN)
    kernel_params = prepare_kernel_params(raw_params, HIDDEN)
    token_ids = jax.random.randint(kx, (BATCH, SEQ), 0, VOCAB, dtype=jnp.int32)

    logits = lang_model_forward(token_ids, kernel_params)
    jax.block_until_ready(logits)
    assert logits.shape == (BATCH, VOCAB)
    assert logits.dtype == jnp.float32

    # PyTorch's final `.double()`: done on the host (TPU has no native f64,
    # and we avoid the global jax_enable_x64 side effect).
    logits64 = np.asarray(logits, dtype=np.float64)
    assert logits64.dtype == np.float64

    print("KERNEL_OK")
</pallas_src>

<mosaic_0001>
module attributes {stable_mosaic.version = 11 : i64} {
  func.func @fc3_kernel(%arg0: i32, %arg1: memref<8x128xf32, #tpu.memory_space<vmem>>, %arg2: memref<128x256xbf16, #tpu.memory_space<vmem>>, %arg3: memref<1x256xf32, #tpu.memory_space<vmem>>, %arg4: memref<8x256xf32, #tpu.memory_space<vmem>>) attributes {dimension_semantics = [#tpu.dimension_semantics<parallel>], iteration_bounds = array<i64: 2>, scalar_prefetch = 0 : i64, scratch_operands = 0 : i64, tpu.core_type = #tpu.core_type<tc>, window_params = [{pipeline_mode = #tpu.pipeline_mode<synchronous>, transform_indices = @transform_0, window_bounds = array<i64: 8, 128>}, {transform_indices = @transform_1, window_bounds = array<i64: 128, 256>}, {transform_indices = @transform_2, window_bounds = array<i64: 1, 256>}, {transform_indices = @transform_3, window_bounds = array<i64: 8, 256>}]} {
    %c0 = arith.constant 0 : index
    %c0_0 = arith.constant 0 : index
    %0 = vector.load %arg1[%c0, %c0_0] : memref<8x128xf32, #tpu.memory_space<vmem>>, vector<8x128xf32>
    %1 = arith.truncf %0 : vector<8x128xf32> to vector<8x128xbf16>
    %c0_1 = arith.constant 0 : index
    %c0_2 = arith.constant 0 : index
    %2 = vector.load %arg2[%c0_1, %c0_2] : memref<128x256xbf16, #tpu.memory_space<vmem>>, vector<128x256xbf16>
    %cst = arith.constant dense<0.000000e+00> : vector<8x256xf32>
    %3 = tpu.matmul %1, %2, %cst {dimension_numbers = #tpu.dot_dimension_numbers<[1], [0], [0], [1], [0, 0, 1, 1], [], []>} : vector<8x128xbf16>, vector<128x256xbf16>, vector<8x256xf32> -> vector<8x256xf32>
    %c0_3 = arith.constant 0 : index
    %c0_4 = arith.constant 0 : index
    %4 = vector.load %arg3[%c0_3, %c0_4] : memref<1x256xf32, #tpu.memory_space<vmem>>, vector<1x256xf32>
    %5 = vector.broadcast %4 : vector<1x256xf32> to vector<8x256xf32>
    %6 = arith.addf %3, %5 : vector<8x256xf32>
    %c0_5 = arith.constant 0 : index
    %c0_6 = arith.constant 0 : index
    %7 = vector.load %arg4[%c0_5, %c0_6] : memref<8x256xf32, #tpu.memory_space<vmem>>, vector<8x256xf32>
    tpu.vector_store %arg4[%c0_5, %c0_6], %6 {strides = array<i32>} : memref<8x256xf32, #tpu.memory_space<vmem>>, vector<8x256xf32>,
    return
  }
  func.func @transform_0(%arg0: i32) -> (i32, i32) {
    %c0_i32 = arith.constant 0 : i32
    %c0_i32_0 = arith.constant 0 : i32
    %c0_i32_1 = arith.constant 0 : i32
    return %c0_i32, %c0_i32_0 : i32, i32
  }
  func.func @transform_1(%arg0: i32) -> (i32, i32) {
    %c0_i32 = arith.constant 0 : i32
    %c0_i32_0 = arith.constant 0 : i32
    return %c0_i32, %arg0 : i32, i32
  }
  func.func @transform_2(%arg0: i32) -> (i32, i32) {
    %c0_i32 = arith.constant 0 : i32
    %c0_i32_0 = arith.constant 0 : i32
    return %c0_i32, %arg0 : i32, i32
  }
  func.func @transform_3(%arg0: i32) -> (i32, i32) {
    %c0_i32 = arith.constant 0 : i32
    %c0_i32_0 = arith.constant 0 : i32
    return %c0_i32, %arg0 : i32, i32
  }
}

module attributes {stable_mosaic.version = 11 : i64} {
  func.func @lstm_chunk_kernel(%arg0: i32, %arg1: memref<8x8x512xf32, #tpu.memory_space<vmem>>, %arg2: memref<128x512xf32, #tpu.memory_space<any>>, %arg3: memref<8x128xf32, #tpu.memory_space<vmem>>, %arg4: memref<128x512xf32, #tpu.memory_space<vmem>>, %arg5: memref<8x128xf32, #tpu.memory_space<vmem>>, %arg6: memref<8x128xf32, #tpu.memory_space<vmem>>, %arg7: memref<!tpu.dma_semaphore, #tpu.memory_space<semaphore_mem>>) attributes {dimension_semantics = [#tpu.dimension_semantics<arbitrary>], iteration_bounds = array<i64: 1>, scalar_prefetch = 0 : i64, scratch_operands = 4 : i64, tpu.core_type = #tpu.core_type<tc>, window_params = [{transform_indices = @transform_0, window_bounds = array<i64: 8, 8, 512>}, {}, {pipeline_mode = #tpu.pipeline_mode<synchronous>, transform_indices = @transform_2, window_bounds = array<i64: 8, 128>}]} {
    %c0_i32 = arith.constant 0 : i32
    %0 = arith.cmpi eq, %arg0, %c0_i32 : i32
    %1 = arith.extui %0 : i1 to i32
    %c0_i32_0 = arith.constant 0 : i32
    %2 = arith.cmpi ne, %1, %c0_i32_0 : i32
    scf.if %2 {
      tpu.enqueue_dma source(%arg2 : memref<128x512xf32, #tpu.memory_space<any>>) target(%arg4 : memref<128x512xf32, #tpu.memory_space<vmem>>) target_semaphore(%arg7 : memref<!tpu.dma_semaphore, #tpu.memory_space<semaphore_mem>>)
      tpu.wait_dma2 semaphore(%arg7 : memref<!tpu.dma_semaphore, #tpu.memory_space<semaphore_mem>>) src(%arg2 : memref<128x512xf32, #tpu.memory_space<any>>) dst(%arg4 : memref<128x512xf32, #tpu.memory_space<vmem>>)
      %cst_44 = arith.constant 0.000000e+00 : f32
      %179 = vector.broadcast %cst_44 : f32 to vector<8x128xf32>
      %c0_45 = arith.constant 0 : index
      %c0_46 = arith.constant 0 : index
      %180 = vector.load %arg5[%c0_45, %c0_46] : memref<8x128xf32, #tpu.memory_space<vmem>>, vector<8x128xf32>
      tpu.vector_store %arg5[%c0_45, %c0_46], %179 {strides = array<i32>} : memref<8x128xf32, #tpu.memory_space<vmem>>, vector<8x128xf32>,
      %cst_47 = arith.constant 0.000000e+00 : f32
      %181 = vector.broadcast %cst_47 : f32 to vector<8x128xf32>
      %c0_48 = arith.constant 0 : index
      %c0_49 = arith.constant 0 : index
      %182 = vector.load %arg6[%c0_48, %c0_49] : memref<8x128xf32, #tpu.memory_space<vmem>>, vector<8x128xf32>
      tpu.vector_store %arg6[%c0_48, %c0_49], %181 {strides = array<i32>} : memref<8x128xf32, #tpu.memory_space<vmem>>, vector<8x128xf32>,
    } else {
    }
    %c0 = arith.constant 0 : index
    %c0_1 = arith.constant 0 : index
    %3 = vector.load %arg4[%c0, %c0_1] : memref<128x512xf32, #tpu.memory_space<vmem>>, vector<128x512xf32>
    %c0_2 = arith.constant 0 : index
    %c0_3 = arith.constant 0 : index
    %4 = vector.load %arg5[%c0_2, %c0_3] : memref<8x128xf32, #tpu.memory_space<vmem>>, vector<8x128xf32>
    %c0_4 = arith.constant 0 : index
    %c0_5 = arith.constant 0 : index
    %5 = vector.load %arg6[%c0_4, %c0_5] : memref<8x128xf32, #tpu.memory_space<vmem>>, vector<8x128xf32>
    %c0_i32_6 = arith.constant 0 : i32
    %6 = arith.index_cast %c0_i32_6 : i32 to index
    %c0_7 = arith.constant 0 : index
    %c0_8 = arith.constant 0 : index
    %7 = vector.load %arg1[%6, %c0_7, %c0_8] : memref<8x8x512xf32, #tpu.memory_space<vmem>>, vector<1x8x512xf32>
    %8 = vector.shape_cast %7 : vector<1x8x512xf32> to vector<8x512xf32>
    %cst = arith.constant dense<0.000000e+00> : vector<8x512xf32>
    %9 = tpu.matmul %4, %3, %cst {dimension_numbers = #tpu.dot_dimension_numbers<[1], [0], [0], [1], [0, 0, 1, 1], [], []>} : vector<8x128xf32>, vector<128x512xf32>, vector<8x512xf32> -> vector<8x512xf32>
    %10 = arith.addf %8, %9 : vector<8x512xf32>
    %11 = vector.extract_strided_slice %10 {offsets = [0, 0], sizes = [8, 384], strides = [1, 1]} : vector<8x512xf32> to vector<8x384xf32>
    %12 = arith.negf %11 : vector<8x384xf32>
    %13 = math.exp %12 : vector<8x384xf32>
    %cst_9 = arith.constant 1.000000e+00 : f32
    %14 = vector.broadcast %cst_9 : f32 to vector<8x384xf32>
    %15 = arith.addf %14, %13 : vector<8x384xf32>
    %16 = arith.divf %14, %15 : vector<8x384xf32>
    %17 = vector.extract_strided_slice %10 {offsets = [0, 384], sizes = [8, 128], strides = [1, 1]} : vector<8x512xf32> to vector<8x128xf32>
    %18 = math.tanh %17 : vector<8x128xf32>
    %19 = vector.extract_strided_slice %16 {offsets = [0, 0], sizes = [8, 128], strides = [1, 1]} : vector<8x384xf32> to vector<8x128xf32>
    %20 = vector.extract_strided_slice %16 {offsets = [0, 128], sizes = [8, 128], strides = [1, 1]} : vector<8x384xf32> to vector<8x128xf32>
    %21 = vector.extract_strided_slice %16 {offsets = [0, 256], sizes = [8, 128], strides = [1, 1]} : vector<8x384xf32> to vector<8x128xf32>
    %22 = arith.mulf %20, %5 : vector<8x128xf32>
    %23 = arith.mulf %19, %18 : vector<8x128xf32>
    %24 = arith.addf %22, %23 : vector<8x128xf32>
    %25 = math.tanh %24 : vector<8x128xf32>
    %26 = arith.mulf %21, %25 : vector<8x128xf32>
    %c1_i32 = arith.constant 1 : i32
    %27 = arith.index_cast %c1_i32 : i32 to index
    %c0_10 = arith.constant 0 : index
    %c0_11 = arith.constant 0 : index
    %28 = vector.load %arg1[%27, %c0_10, %c0_11] : memref<8x8x512xf32, #tpu.memory_space<vmem>>, vector<1x8x512xf32>
    %29 = vector.shape_cast %28 : vector<1x8x512xf32> to vector<8x512xf32>
    %cst_12 = arith.constant dense<0.000000e+00> : vector<8x512xf32>
    %30 = tpu.matmul %26, %3, %cst_12 {dimension_numbers = #tpu.dot_dimension_numbers<[1], [0], [0], [1], [0, 0, 1, 1], [], []>} : vector<8x128xf32>, vector<128x512xf32>, vector<8x512xf32> -> vector<8x512xf32>
    %31 = arith.addf %29, %30 : vector<8x512xf32>
    %32 = vector.extract_strided_slice %31 {offsets = [0, 0], sizes = [8, 384], strides = [1, 1]} : vector<8x512xf32> to vector<8x384xf32>
    %33 = arith.negf %32 : vector<8x384xf32>
    %34 = math.exp %33 : vector<8x384xf32>
    %cst_13 = arith.constant 1.000000e+00 : f32
    %35 = vector.broadcast %cst_13 : f32 to vector<8x384xf32>
    %36 = arith.addf %35, %34 : vector<8x384xf32>
    %37 = arith.divf %35, %36 : vector<8x384xf32>
    %38 = vector.extract_strided_slice %31 {offsets = [0, 384], sizes = [8, 128], strides = [1, 1]} : vector<8x512xf32> to vector<8x128xf32>
    %39 = math.tanh %38 : vector<8x128xf32>
    %40 = vector.extract_strided_slice %37 {offsets = [0, 0], sizes = [8, 128], strides = [1, 1]} : vector<8x384xf32> to vector<8x128xf32>
    %41 = vector.extract_strided_slice %37 {offsets = [0, 128], sizes = [8, 128], strides = [1, 1]} : vector<8x384xf32> to vector<8x128xf32>
    %42 = vector.extract_strided_slice %37 {offsets = [0, 256], sizes = [8, 128], strides = [1, 1]} : vector<8x384xf32> to vector<8x128xf32>
    %43 = arith.mulf %41, %24 : vector<8x128xf32>
    %44 = arith.mulf %40, %39 : vector<8x128xf32>
    %45 = arith.addf %43, %44 : vector<8x128xf32>
    %46 = math.tanh %45 : vector<8x128xf32>
    %47 = arith.mulf %42, %46 : vector<8x128xf32>
    %c2_i32 = arith.constant 2 : i32
    %48 = arith.index_cast %c2_i32 : i32 to index
    %c0_14 = arith.constant 0 : index
    %c0_15 = arith.constant 0 : index
    %49 = vector.load %arg1[%48, %c0_14, %c0_15] : memref<8x8x512xf32, #tpu.memory_space<vmem>>, vector<1x8x512xf32>
    %50 = vector.shape_cast %49 : vector<1x8x512xf32> to vector<8x512xf32>
    %cst_16 = arith.constant dense<0.000000e+00> : vector<8x512xf32>
    %51 = tpu.matmul %47, %3, %cst_16 {dimension_numbers = #tpu.dot_dimension_numbers<[1], [0], [0], [1], [0, 0, 1, 1], [], []>} : vector<8x128xf32>, vector<128x512xf32>, vector<8x512xf32> -> vector<8x512xf32>
    %52 = arith.addf %50, %51 : vector<8x512xf32>
    %53 = vector.extract_strided_slice %52 {offsets = [0, 0], sizes = [8, 384], strides = [1, 1]} : vector<8x512xf32> to vector<8x384xf32>
    %54 = arith.negf %53 : vector<8x384xf32>
    %55 = math.exp %54 : vector<8x384xf32>
    %cst_17 = arith.constant 1.000000e+00 : f32
    %56 = vector.broadcast %cst_17 : f32 to vector<8x384xf32>
    %57 = arith.addf %56, %55 : vector<8x384xf32>
    %58 = arith.divf %56, %57 : vector<8x384xf32>
    %59 = vector.extract_strided_slice %52 {offsets = [0, 384], sizes = [8, 128], strides = [1, 1]} : vector<8x512xf32> to vector<8x128xf32>
    %60 = math.tanh %59 : vector<8x128xf32>
    %61 = vector.extract_strided_slice %58 {offsets = [0, 0], sizes = [8, 128], strides = [1, 1]} : vector<8x384xf32> to vector<8x128xf32>
    %62 = vector.extract_strided_slice %58 {offsets = [0, 128], sizes = [8, 128], strides = [1, 1]} : vector<8x384xf32> to vector<8x128xf32>
    %63 = vector.extract_strided_slice %58 {offsets = [0, 256], sizes = [8, 128], strides = [1, 1]} : vector<8x384xf32> to vector<8x128xf32>
    %64 = arith.mulf %62, %45 : vector<8x128xf32>
    %65 = arith.mulf %61, %60 : vector<8x128xf32>
    %66 = arith.addf %64, %65 : vector<8x128xf32>
    %67 = math.tanh %66 : vector<8x128xf32>
    %68 = arith.mulf %63, %67 : vector<8x128xf32>
    %c3_i32 = arith.constant 3 : i32
    %69 = arith.index_cast %c3_i32 : i32 to index
    %c0_18 = arith.constant 0 : index
    %c0_19 = arith.constant 0 : index
    %70 = vector.load %arg1[%69, %c0_18, %c0_19] : memref<8x8x512xf32, #tpu.memory_space<vmem>>, vector<1x8x512xf32>
    %71 = vector.shape_cast %70 : vector<1x8x512xf32> to vector<8x512xf32>
    %cst_20 = arith.constant dense<0.000000e+00> : vector<8x512xf32>
    %72 = tpu.matmul %68, %3, %cst_20 {dimension_numbers = #tpu.dot_dimension_numbers<[1], [0], [0], [1], [0, 0, 1, 1], [], []>} : vector<8x128xf32>, vector<128x512xf32>, vector<8x512xf32> -> vector<8x512xf32>
    %73 = arith.addf %71, %72 : vector<8x512xf32>
    %74 = vector.extract_strided_slice %73 {offsets = [0, 0], sizes = [8, 384], strides = [1, 1]} : vector<8x512xf32> to vector<8x384xf32>
    %75 = arith.negf %74 : vector<8x384xf32>
    %76 = math.exp %75 : vector<8x384xf32>
    %cst_21 = arith.constant 1.000000e+00 : f32
    %77 = vector.broadcast %cst_21 : f32 to vector<8x384xf32>
    %78 = arith.addf %77, %76 : vector<8x384xf32>
    %79 = arith.divf %77, %78 : vector<8x384xf32>
    %80 = vector.extract_strided_slice %73 {offsets = [0, 384], sizes = [8, 128], strides = [1, 1]} : vector<8x512xf32> to vector<8x128xf32>
    %81 = math.tanh %80 : vector<8x128xf32>
    %82 = vector.extract_strided_slice %79 {offsets = [0, 0], sizes = [8, 128], strides = [1, 1]} : vector<8x384xf32> to vector<8x128xf32>
    %83 = vector.extract_strided_slice %79 {offsets = [0, 128], sizes = [8, 128], strides = [1, 1]} : vector<8x384xf32> to vector<8x128xf32>
    %84 = vector.extract_strided_slice %79 {offsets = [0, 256], sizes = [8, 128], strides = [1, 1]} : vector<8x384xf32> to vector<8x128xf32>
    %85 = arith.mulf %83, %66 : vector<8x128xf32>
    %86 = arith.mulf %82, %81 : vector<8x128xf32>
    %87 = arith.addf %85, %86 : vector<8x128xf32>
    %88 = math.tanh %87 : vector<8x128xf32>
    %89 = arith.mulf %84, %88 : vector<8x128xf32>
    %c4_i32 = arith.constant 4 : i32
    %90 = arith.index_cast %c4_i32 : i32 to index
    %c0_22 = arith.constant 0 : index
    %c0_23 = arith.constant 0 : index
    %91 = vector.load %arg1[%90, %c0_22, %c0_23] : memref<8x8x512xf32, #tpu.memory_space<vmem>>, vector<1x8x512xf32>
    %92 = vector.shape_cast %91 : vector<1x8x512xf32> to vector<8x512xf32>
    %cst_24 = arith.constant dense<0.000000e+00> : vector<8x512xf32>
    %93 = tpu.matmul %89, %3, %cst_24 {dimension_numbers = #tpu.dot_dimension_numbers<[1], [0], [0], [1], [0, 0, 1, 1], [], []>} : vector<8x128xf32>, vector<128x512xf32>, vector<8x512xf32> -> vector<8x512xf32>
    %94 = arith.addf %92, %93 : vector<8x512xf32>
    %95 = vector.extract_strided_slice %94 {offsets = [0, 0], sizes = [8, 384], strides = [1, 1]} : vector<8x512xf32> to vector<8x384xf32>
    %96 = arith.negf %95 : vector<8x384xf32>
    %97 = math.exp %96 : vector<8x384xf32>
    %cst_25 = arith.constant 1.000000e+00 : f32
    %98 = vector.broadcast %cst_25 : f32 to vector<8x384xf32>
    %99 = arith.addf %98, %97 : vector<8x384xf32>
    %100 = arith.divf %98, %99 : vector<8x384xf32>
    %101 = vector.extract_strided_slice %94 {offsets = [0, 384], sizes = [8, 128], strides = [1, 1]} : vector<8x512xf32> to vector<8x128xf32>
    %102 = math.tanh %101 : vector<8x128xf32>
    %103 = vector.extract_strided_slice %100 {offsets = [0, 0], sizes = [8, 128], strides = [1, 1]} : vector<8x384xf32> to vector<8x128xf32>
    %104 = vector.extract_strided_slice %100 {offsets = [0, 128], sizes = [8, 128], strides = [1, 1]} : vector<8x384xf32> to vector<8x128xf32>
    %105 = vector.extract_strided_slice %100 {offsets = [0, 256], sizes = [8, 128], strides = [1, 1]} : vector<8x384xf32> to vector<8x128xf32>
    %106 = arith.mulf %104, %87 : vector<8x128xf32>
    %107 = arith.mulf %103, %102 : vector<8x128xf32>
    %108 = arith.addf %106, %107 : vector<8x128xf32>
    %109 = math.tanh %108 : vector<8x128xf32>
    %110 = arith.mulf %105, %109 : vector<8x128xf32>
    %c5_i32 = arith.constant 5 : i32
    %111 = arith.index_cast %c5_i32 : i32 to index
    %c0_26 = arith.constant 0 : index
    %c0_27 = arith.constant 0 : index
    %112 = vector.load %arg1[%111, %c0_26, %c0_27] : memref<8x8x512xf32, #tpu.memory_space<vmem>>, vector<1x8x512xf32>
    %113 = vector.shape_cast %112 : vector<1x8x512xf32> to vector<8x512xf32>
    %cst_28 = arith.constant dense<0.000000e+00> : vector<8x512xf32>
    %114 = tpu.matmul %110, %3, %cst_28 {dimension_numbers = #tpu.dot_dimension_numbers<[1], [0], [0], [1], [0, 0, 1, 1], [], []>} : vector<8x128xf32>, vector<128x512xf32>, vector<8x512xf32> -> vector<8x512xf32>
    %115 = arith.addf %113, %114 : vector<8x512xf32>
    %116 = vector.extract_strided_slice %115 {offsets = [0, 0], sizes = [8, 384], strides = [1, 1]} : vector<8x512xf32> to vector<8x384xf32>
    %117 = arith.negf %116 : vector<8x384xf32>
    %118 = math.exp %117 : vector<8x384xf32>
    %cst_29 = arith.constant 1.000000e+00 : f32
    %119 = vector.broadcast %cst_29 : f32 to vector<8x384xf32>
    %120 = arith.addf %119, %118 : vector<8x384xf32>
    %121 = arith.divf %119, %120 : vector<8x384xf32>
    %122 = vector.extract_strided_slice %115 {offsets = [0, 384], sizes = [8, 128], strides = [1, 1]} : vector<8x512xf32> to vector<8x128xf32>
    %123 = math.tanh %122 : vector<8x128xf32>
    %124 = vector.extract_strided_slice %121 {offsets = [0, 0], sizes = [8, 128], strides = [1, 1]} : vector<8x384xf32> to vector<8x128xf32>
    %125 = vector.extract_strided_slice %121 {offsets = [0, 128], sizes = [8, 128], strides = [1, 1]} : vector<8x384xf32> to vector<8x128xf32>
    %126 = vector.extract_strided_slice %121 {offsets = [0, 256], sizes = [8, 128], strides = [1, 1]} : vector<8x384xf32> to vector<8x128xf32>
    %127 = arith.mulf %125, %108 : vector<8x128xf32>
    %128 = arith.mulf %124, %123 : vector<8x128xf32>
    %129 = arith.addf %127, %128 : vector<8x128xf32>
    %130 = math.tanh %129 : vector<8x128xf32>
    %131 = arith.mulf %126, %130 : vector<8x128xf32>
    %c6_i32 = arith.constant 6 : i32
    %132 = arith.index_cast %c6_i32 : i32 to index
    %c0_30 = arith.constant 0 : index
    %c0_31 = arith.constant 0 : index
    %133 = vector.load %arg1[%132, %c0_30, %c0_31] : memref<8x8x512xf32, #tpu.memory_space<vmem>>, vector<1x8x512xf32>
    %134 = vector.shape_cast %133 : vector<1x8x512xf32> to vector<8x512xf32>
    %cst_32 = arith.constant dense<0.000000e+00> : vector<8x512xf32>
    %135 = tpu.matmul %131, %3, %cst_32 {dimension_numbers = #tpu.dot_dimension_numbers<[1], [0], [0], [1], [0, 0, 1, 1], [], []>} : vector<8x128xf32>, vector<128x512xf32>, vector<8x512xf32> -> vector<8x512xf32>
    %136 = arith.addf %134, %135 : vector<8x512xf32>
    %137 = vector.extract_strided_slice %136 {offsets = [0, 0], sizes = [8, 384], strides = [1, 1]} : vector<8x512xf32> to vector<8x384xf32>
    %138 = arith.negf %137 : vector<8x384xf32>
    %139 = math.exp %138 : vector<8x384xf32>
    %cst_33 = arith.constant 1.000000e+00 : f32
    %140 = vector.broadcast %cst_33 : f32 to vector<8x384xf32>
    %141 = arith.addf %140, %139 : vector<8x384xf32>
    %142 = arith.divf %140, %141 : vector<8x384xf32>
    %143 = vector.extract_strided_slice %136 {offsets = [0, 384], sizes = [8, 128], strides = [1, 1]} : vector<8x512xf32> to vector<8x128xf32>
    %144 = math.tanh %143 : vector<8x128xf32>
    %145 = vector.extract_strided_slice %142 {offsets = [0, 0], sizes = [8, 128], strides = [1, 1]} : vector<8x384xf32> to vector<8x128xf32>
    %146 = vector.extract_strided_slice %142 {offsets = [0, 128], sizes = [8, 128], strides = [1, 1]} : vector<8x384xf32> to vector<8x128xf32>
    %147 = vector.extract_strided_slice %142 {offsets = [0, 256], sizes = [8, 128], strides = [1, 1]} : vector<8x384xf32> to vector<8x128xf32>
    %148 = arith.mulf %146, %129 : vector<8x128xf32>
    %149 = arith.mulf %145, %144 : vector<8x128xf32>
    %150 = arith.addf %148, %149 : vector<8x128xf32>
    %151 = math.tanh %150 : vector<8x128xf32>
    %152 = arith.mulf %147, %151 : vector<8x128xf32>
    %c7_i32 = arith.constant 7 : i32
    %153 = arith.index_cast %c7_i32 : i32 to index
    %c0_34 = arith.constant 0 : index
    %c0_35 = arith.constant 0 : index
    %154 = vector.load %arg1[%153, %c0_34, %c0_35] : memref<8x8x512xf32, #tpu.memory_space<vmem>>, vector<1x8x512xf32>
    %155 = vector.shape_cast %154 : vector<1x8x512xf32> to vector<8x512xf32>
    %cst_36 = arith.constant dense<0.000000e+00> : vector<8x512xf32>
    %156 = tpu.matmul %152, %3, %cst_36 {dimension_numbers = #tpu.dot_dimension_numbers<[1], [0], [0], [1], [0, 0, 1, 1], [], []>} : vector<8x128xf32>, vector<128x512xf32>, vector<8x512xf32> -> vector<8x512xf32>
    %157 = arith.addf %155, %156 : vector<8x512xf32>
    %158 = vector.extract_strided_slice %157 {offsets = [0, 0], sizes = [8, 384], strides = [1, 1]} : vector<8x512xf32> to vector<8x384xf32>
    %159 = arith.negf %158 : vector<8x384xf32>
    %160 = math.exp %159 : vector<8x384xf32>
    %cst_37 = arith.constant 1.000000e+00 : f32
    %161 = vector.broadcast %cst_37 : f32 to vector<8x384xf32>
    %162 = arith.addf %161, %160 : vector<8x384xf32>
    %163 = arith.divf %161, %162 : vector<8x384xf32>
    %164 = vector.extract_strided_slice %157 {offsets = [0, 384], sizes = [8, 128], strides = [1, 1]} : vector<8x512xf32> to vector<8x128xf32>
    %165 = math.tanh %164 : vector<8x128xf32>
    %166 = vector.extract_strided_slice %163 {offsets = [0, 0], sizes = [8, 128], strides = [1, 1]} : vector<8x384xf32> to vector<8x128xf32>
    %167 = vector.extract_strided_slice %163 {offsets = [0, 128], sizes = [8, 128], strides = [1, 1]} : vector<8x384xf32> to vector<8x128xf32>
    %168 = vector.extract_strided_slice %163 {offsets = [0, 256], sizes = [8, 128], strides = [1, 1]} : vector<8x384xf32> to vector<8x128xf32>
    %169 = arith.mulf %167, %150 : vector<8x128xf32>
    %170 = arith.mulf %166, %165 : vector<8x128xf32>
    %171 = arith.addf %169, %170 : vector<8x128xf32>
    %172 = math.tanh %171 : vector<8x128xf32>
    %173 = arith.mulf %168, %172 : vector<8x128xf32>
    %c8_i32 = arith.constant 8 : i32
    %c0_38 = arith.constant 0 : index
    %c0_39 = arith.constant 0 : index
    %174 = vector.load %arg5[%c0_38, %c0_39] : memref<8x128xf32, #tpu.memory_space<vmem>>, vector<8x128xf32>
    tpu.vector_store %arg5[%c0_38, %c0_39], %173 {strides = array<i32>} : memref<8x128xf32, #tpu.memory_space<vmem>>, vector<8x128xf32>,
    %c0_40 = arith.constant 0 : index
    %c0_41 = arith.constant 0 : index
    %175 = vector.load %arg6[%c0_40, %c0_41] : memref<8x128xf32, #tpu.memory_space<vmem>>, vector<8x128xf32>
    tpu.vector_store %arg6[%c0_40, %c0_41], %171 {strides = array<i32>} : memref<8x128xf32, #tpu.memory_space<vmem>>, vector<8x128xf32>,
    %c0_i32_42 = arith.constant 0 : i32
    %176 = arith.cmpi eq, %arg0, %c0_i32_42 : i32
    %177 = arith.extui %176 : i1 to i32
    %c0_i32_43 = arith.constant 0 : i32
    %178 = arith.cmpi ne, %177, %c0_i32_43 : i32
    scf.if %178 {
      %c0_44 = arith.constant 0 : index
      %c0_45 = arith.constant 0 : index
      %179 = vector.load %arg5[%c0_44, %c0_45] : memref<8x128xf32, #tpu.memory_space<vmem>>, vector<8x128xf32>
      %c0_46 = arith.constant 0 : index
      %c0_47 = arith.constant 0 : index
      %180 = vector.load %arg3[%c0_46, %c0_47] : memref<8x128xf32, #tpu.memory_space<vmem>>, vector<8x128xf32>
      tpu.vector_store %arg3[%c0_46, %c0_47], %179 {strides = array<i32>} : memref<8x128xf32, #tpu.memory_space<vmem>>, vector<8x128xf32>,
    } else {
    }
    return
  }
  func.func @transform_0(%arg0: i32) -> (i32, i32, i32) {
    %c0_i32 = arith.constant 0 : i32
    %c0_i32_0 = arith.constant 0 : i32
    %c0_i32_1 = arith.constant 0 : i32
    return %arg0, %c0_i32, %c0_i32_0 : i32, i32, i32
  }
  func.func @transform_2(%arg0: i32) -> (i32, i32) {
    %c0_i32 = arith.constant 0 : i32
    %c0_i32_0 = arith.constant 0 : i32
    %c0_i32_1 = arith.constant 0 : i32
    return %c0_i32, %c0_i32_0 : i32, i32
  }
}

</mosaic_0001>

<bundles_post_ra>
// kernel: lang_model_forward.3
= control target key start
LH: loop header
LB: loop body
LE: loop exit
PB: predicated region body
PF: predicated region fallthrough
CT: control target
= control target key end

     0   :  { %s638_s12 = smov 0   ;;  %s640_s13 = smov 0   ;;  %s714_s0 = inlined_call_operand.vmem [shape: f32[8,128], index: 0, kind: input, shape index: {}]   ;;  %s715_s1 = inlined_call_operand.vmem [shape: bf16[128,512], index: 1, kind: input, shape index: {}]   ;;  %s716_s2 = inlined_call_operand.vmem [shape: f32[1,512], index: 2, kind: input, shape index: {}]   ;;  %s717_s3 = inlined_call_operand.vmem [shape: f32[8,512], index: 3, kind: output, shape index: {}]  }
   0x1   :  { %s642_s14 = smov 0  }
   0x2 LB: > { %s513_s15 = sadd.s32 4294967295, %s615_s14   ;;  %s655_s16 = sadd.s32 1, %s615_s14   ;;  %s615_s14 = sphi %s642_s14, %s720_s14   ;;  %s611_s13 = sphi %s640_s13, %s719_s13   ;;  %s607_s12 = sphi %s638_s12, %s718_s12  }
   0x3   : > { %s38_s17 = ssub.s32 %s615_s14, %s655_s16  ;;  %s41_s18 = sadd.s32 1, %s611_s13 }
   0x4   : > { %p39_p0 = scmp.eq.s32.totalorder %s38_s17, 0  ;;  %p48_p1 = scmp.ne.s32.totalorder %s611_s13, %s607_s12 }
   0x5   : > { %p49_p2 = scmp.eq.s32.totalorder %s615_s14, 0  ;;  %p516_p4 = scmp.ge.s32.totalorder %s615_s14, 2 }
   0x6   : > { %s664_s19 = scalar_select %p39_p0, %s611_s13, %s41_s18  }
   0x7   : > { %p50_p3 = por %p49_p2, %p48_p1  ;;  %129 = sbr.rel (%p516_p4) target bundleno = 24 (0x18), region = 20 }
   0xc   : > { %132 = sbr.rel (!%p50_p3) target bundleno = 24 (0x18), region = 24  ;;  %s134_s20 = sand.u32 (%p50_p3), 1, %s611_s13  }
   0xd   : > { %s543_s21 = sshll.u32 (%p50_p3), %s615_s14, 3  ;;  %s517_s22 = sshll.u32 (%p50_p3), %s134_s20, 7 }
   0xe   : > { %s672_s25 = scalar_lea.vmem (%p50_p3), %s715_s1, %s543_s21  ;;  %s136_s26 = scalar_lea.vmem (%p50_p3), [#allocation2], %s517_s22 }
   0xf   : > { %v198_v0 = vld [vmem:[%s672_s25] sm:$0xff] (%p50_p3)  ;;  %v200_v1 = vld [vmem:[%s672_s25 + $0x10] sm:$0xff] (%p50_p3) }
  0x10   : > { %v202_v2 = vld [vmem:[%s672_s25 + $0x20] sm:$0xff] (%p50_p3)  ;;  %199 = vst [vmem:[%s136_s26] sm:$0xff] (%p50_p3), %v198_v0  ;;  %201 = vst [vmem:[%s136_s26 + $0x8] sm:$0xff] (%p50_p3), %v200_v1  ;;  %v204_v3 = vld [vmem:[%s672_s25 + $0x30] sm:$0xff] (%p50_p3) }
  0x11   : > { %203 = vst [vmem:[%s136_s26 + $0x10] sm:$0xff] %v202_v2  ;;  %v206_v4 = vld [vmem:[%s672_s25 + $0x40] sm:$0xff]  ;;  %v208_v5 = vld [vmem:[%s672_s25 + $0x50] sm:$0xff]  ;;  %205 = vst [vmem:[%s136_s26 + $0x18] sm:$0xff] %v204_v3 }
  0x12   : > { %207 = vst [vmem:[%s136_s26 + $0x20] sm:$0xff] %v206_v4  ;;  %209 = vst [vmem:[%s136_s26 + $0x28] sm:$0xff] %v208_v5  ;;  %v210_v6 = vld [vmem:[%s672_s25 + $0x60] sm:$0xff]  ;;  %v212_v7 = vld [vmem:[%s672_s25 + $0x70] sm:$0xff] }
  0x13   : > { %v214_v8 = vld [vmem:[%s672_s25 + $0x80] sm:$0xff]  ;;  %211 = vst [vmem:[%s136_s26 + $0x30] sm:$0xff] %v210_v6  ;;  %213 = vst [vmem:[%s136_s26 + $0x38] sm:$0xff] %v212_v7  ;;  %v216_v9 = vld [vmem:[%s672_s25 + $0x90] sm:$0xff] }
  0x14   : > { %215 = vst [vmem:[%s136_s26 + $0x40] sm:$0xff] %v214_v8  ;;  %v218_v10 = vld [vmem:[%s672_s25 + $0xa0] sm:$0xff]  ;;  %v220_v11 = vld [vmem:[%s672_s25 + $0xb0] sm:$0xff]  ;;  %217 = vst [vmem:[%s136_s26 + $0x48] sm:$0xff] %v216_v9 }
  0x15   : > { %219 = vst [vmem:[%s136_s26 + $0x50] sm:$0xff] %v218_v10  ;;  %221 = vst [vmem:[%s136_s26 + $0x58] sm:$0xff] %v220_v11  ;;  %v222_v12 = vld [vmem:[%s672_s25 + $0xc0] sm:$0xff]  ;;  %v224_v13 = vld [vmem:[%s672_s25 + $0xd0] sm:$0xff] }
  0x16   : > { %v226_v14 = vld [vmem:[%s672_s25 + $0xe0] sm:$0xff]  ;;  %223 = vst [vmem:[%s136_s26 + $0x60] sm:$0xff] %v222_v12  ;;  %225 = vst [vmem:[%s136_s26 + $0x68] sm:$0xff] %v224_v13  ;;  %v228_v15 = vld [vmem:[%s672_s25 + $0xf0] sm:$0xff] }
  0x17   : > { %227 = vst [vmem:[%s136_s26 + $0x70] sm:$0xff] %v226_v14  ;;  %229 = vst [vmem:[%s136_s26 + $0x78] sm:$0xff] %v228_v15 }
  0x18 PF: > { %p520_p5 = scmp.ge.s32.totalorder %s615_s14, 1  ;;  %p242_p6 = scmp.lt.s32.totalorder %s615_s14, 3 }
  0x1a   : > { %p243_p7 = pnand %p520_p5, %p242_p6 }
  0x1b   : > { %s249_s27 = sand.u32 (!%p243_p7), 1, %s607_s12   ;;  %s522_s5 = sshll.u32 (!%p243_p7), %s513_s15, 1 }
  0x1c   : > { %246 = sbr.rel (%p243_p7) target bundleno = 265 (0x109), region = 66  ;;  %s521_s28 = sshll.u32 (!%p243_p7), %s249_s27, 7 }
  0x1d   : > { %s251_s29 = scalar_lea.vmem (!%p243_p7), [#allocation2], %s521_s28  ;;  %p278_p8 = scmp.lt.s32.totalorder (!%p243_p7), %s522_s5, 3 }
  0x21   : > { %v617_v16 = vmov 0   ;;  %v569_v17 = vld [vmem:[%s251_s29 + $0x74] ss:$8 sps:$4 sm:$0xff]   ;;  %v571_v18 = vld [vmem:[%s251_s29 + $0x70] ss:$8 sps:$4 sm:$0xff]   ;;  %v289_v33 = vld [vmem:[%s714_s0] sm:$0xff]  ;;  %v309_v35 = vlaneseq }
  0x22   : > { %431 = vmatprep.mubr.bf16.mxu0 %v617_v16  ;;  %399 = vmatprep.subr.bf16.mxu0 %v569_v17  ;;  %v572_v19 = vld [vmem:[%s251_s29 + $0x64] ss:$8 sps:$4 sm:$0xff]   ;;  %v574_v20 = vld [vmem:[%s251_s29 + $0x60] ss:$8 sps:$4 sm:$0xff]   ;;  %v575_v21 = vld [vmem:[%s251_s29 + $0x54] ss:$8 sps:$4 sm:$0xff]   ;;  %v290_v34 = vpack.c.bf16 %v289_v33, %v289_v33 }
  0x23   : > { %400 = vmatpush1.bf16.msra.mxu0 %v571_v18  ;;  %v577_v22 = vld [vmem:[%s251_s29 + $0x50] ss:$8 sps:$4 sm:$0xff]   ;;  %v578_v23 = vld [vmem:[%s251_s29 + $0x44] ss:$8 sps:$4 sm:$0xff]   ;;  %v580_v24 = vld [vmem:[%s251_s29 + $0x40] ss:$8 sps:$4 sm:$0xff]  }
  0x24   : > { %401 = vmatprep.subr.bf16.mxu0 %v572_v19  ;;  %v581_v25 = vld [vmem:[%s251_s29 + $0x34] ss:$8 sps:$4 sm:$0xff]   ;;  %v583_v26 = vld [vmem:[%s251_s29 + $0x30] ss:$8 sps:$4 sm:$0xff]   ;;  %v584_v27 = vld [vmem:[%s251_s29 + $0x24] ss:$8 sps:$4 sm:$0xff]  }
  0x25   : > { %v586_v28 = vld [vmem:[%s251_s29 + $0x20] ss:$8 sps:$4 sm:$0xff]   ;;  %v587_v29 = vld [vmem:[%s251_s29 + $0x14] ss:$8 sps:$4 sm:$0xff]   ;;  %v589_v30 = vld [vmem:[%s251_s29 + $0x10] ss:$8 sps:$4 sm:$0xff]  }
  0x26   : > { %v590_v31 = vld [vmem:[%s251_s29 + $0x4] ss:$8 sps:$4 sm:$0xff]   ;;  %v592_v32 = vld [vmem:[%s251_s29] ss:$8 sps:$4 sm:$0xff]   ;;  %s722_s5 = smov (!%p278_p8, %s522_s5), 3  ;;  %v310_v36 = vshrl.u32 %v309_v35, 7 }
  0x27   : > { %402 = vmatpush1.bf16.msra.mxu0 %v574_v20  ;;  %s280_s8 = scalar_lea.vmem %s716_s2, %s722_s5  ;;  %s524_s9 = sshll.u32 %s722_s5, 3 }
  0x28   : > { %403 = vmatprep.subr.bf16.mxu0 %v575_v21  ;;  %v311_v37 = vsub.s32 0, %v310_v36  ;;  %v307_v38 = vld [vmem:[%s280_s8] sm:$0x3]  ;;  %v315_v39 = vsub.s32 1, %v310_v36  ;;  %s286_s12 = scalar_lea.vmem %s717_s3, %s524_s9 }
  0x2a   : > { %v312_v40 = vrot.slane %v307_v38, %v311_v37  ;;  %v316_v41 = vrot.slane %v307_v38, %v315_v39 }
  0x2b   : > { %404 = vmatpush1.bf16.msra.mxu0 %v577_v22 }
  0x2c   : > { %405 = vmatprep.subr.bf16.mxu0 %v578_v23 }
  0x2f   : > { %406 = vmatpush1.bf16.msra.mxu0 %v580_v24 }
  0x30   : > { %407 = vmatprep.subr.bf16.mxu0 %v581_v25 }
  0x33   : > { %408 = vmatpush1.bf16.msra.mxu0 %v583_v26 }
  0x34   : > { %409 = vmatprep.subr.bf16.mxu0 %v584_v27 }
  0x37   : > { %410 = vmatpush1.bf16.msra.mxu0 %v586_v28 }
  0x38   : > { %411 = vmatprep.subr.bf16.mxu0 %v587_v29 }
  0x3b   : > { %412 = vmatpush1.bf16.msra.mxu0 %v589_v30 }
  0x3c   : > { %413 = vmatprep.subr.bf16.mxu0 %v590_v31 }
  0x3f   : > { %414 = vmatpush1.bf16.msra.mxu0 %v592_v32 }
  0x42   : > { %432 = vmatmul.mubr.bf16.vlgmr.msra.gmra.mxu0 %v290_v34 }
 0x102   : > { %v433_v42 = vpop.f32.mrf.mxu0 }
 0x103   : > { %v434_v43 = vadd.f32 %v433_v42, %v312_v40 }
 0x104   : > { %v435_v44 = vpop.f32.mrf.mxu0 }
 0x105   : > { %440 = vst [vmem:[%s286_s12] sm:$0xff] %v434_v43  ;;  %v436_v45 = vadd.f32 %v435_v44, %v316_v41 }
 0x106   : > { %v437_v46 = vpop.f32.mrf.mxu0 }
 0x107   : > { %441 = vst [vmem:[%s286_s12 + $0x8] sm:$0xff] %v436_v45 }
 0x108   : > { %v438_v47 = vpop.f32.mrf.mxu0 }
 0x109 PF: > { %p10_p9 = scmp.ge.s32.totalorder %s655_s16, 4   ;;  %s718_s12 = smov %s611_s13 }
 0x10a   : > { %s719_s13 = smov %s664_s19  ;;  %s720_s14 = smov %s655_s16 }
 0x10b   :  { %12 = sbr.rel (!%p10_p9) target bundleno = 2 (0x2), region = 108 }

// kernel: lang_model_forward.2
= control target key start
LH: loop header
LB: loop body
LE: loop exit
PB: predicated region body
PF: predicated region fallthrough
CT: control target
= control target key end

     0   :  { %s2851_s0 = inlined_call_operand.vmem [shape: f32[8,8,512], index: 0, kind: input, shape index: {}]   ;;  %s2852_s1 = inlined_call_operand.vmem [shape: f32[128,512], index: 1, kind: input, shape index: {}]   ;;  %s2853_s2 = inlined_call_operand.vmem [shape: f32[8,128], index: 2, kind: output, shape index: {}]  }
   0x1   :  { %v1881_v0 = vld [vmem:[%s2852_s1] sm:$0xff]  ;;  %v1886_v1 = vld [vmem:[%s2852_s1 + $0x8] sm:$0xff]  ;;  %v1891_v2 = vld [vmem:[%s2852_s1 + $0x10] sm:$0xff] }
   0x2   :  { %2900 = vst [vmem:[#allocation8_spill] sm:$0xff] %v1881_v0  ;;  %2901 = vst [vmem:[#allocation9_spill] sm:$0xff] %v1886_v1  ;;  %v1896_v3 = vld [vmem:[%s2852_s1 + $0x18] sm:$0xff]  ;;  %v1901_v4 = vld [vmem:[%s2852_s1 + $0x20] sm:$0xff] }
   0x3   :  { %2902 = vst [vmem:[#allocation10_spill] sm:$0xff] %v1891_v2  ;;  %2903 = vst [vmem:[#allocation11_spill] sm:$0xff] %v1896_v3  ;;  %v1906_v5 = vld [vmem:[%s2852_s1 + $0x28] sm:$0xff]  ;;  %v1911_v6 = vld [vmem:[%s2852_s1 + $0x30] sm:$0xff] }
   0x4   :  { %2904 = vst [vmem:[#allocation12_spill] sm:$0xff] %v1901_v4  ;;  %2905 = vst [vmem:[#allocation13_spill] sm:$0xff] %v1906_v5  ;;  %v1916_v7 = vld [vmem:[%s2852_s1 + $0x38] sm:$0xff]  ;;  %v1921_v8 = vld [vmem:[%s2852_s1 + $0x40] sm:$0xff] }
   0x5   :  { %2906 = vst [vmem:[#allocation14_spill] sm:$0xff] %v1911_v6  ;;  %2907 = vst [vmem:[#allocation15_spill] sm:$0xff] %v1916_v7  ;;  %v1926_v9 = vld [vmem:[%s2852_s1 + $0x48] sm:$0xff]  ;;  %v1931_v10 = vld [vmem:[%s2852_s1 + $0x50] sm:$0xff] }
   0x6   :  { %2908 = vst [vmem:[#allocation16_spill] sm:$0xff] %v1921_v8  ;;  %2909 = vst [vmem:[#allocation17_spill] sm:$0xff] %v1926_v9  ;;  %v1936_v11 = vld [vmem:[%s2852_s1 + $0x58] sm:$0xff]  ;;  %v1941_v12 = vld [vmem:[%s2852_s1 + $0x60] sm:$0xff] }
   0x7   :  { %2910 = vst [vmem:[#allocation18_spill] sm:$0xff] %v1931_v10  ;;  %2911 = vst [vmem:[#allocation19_spill] sm:$0xff] %v1936_v11  ;;  %v1946_v13 = vld [vmem:[%s2852_s1 + $0x68] sm:$0xff]  ;;  %v1951_v14 = vld [vmem:[%s2852_s1 + $0x70] sm:$0xff] }
   0x8   :  { %2912 = vst [vmem:[#allocation20_spill] sm:$0xff] %v1941_v12  ;;  %2913 = vst [vmem:[#allocation21_spill] sm:$0xff] %v1946_v13  ;;  %v1956_v15 = vld [vmem:[%s2852_s1 + $0x78] sm:$0xff]  ;;  %v1961_v16 = vld [vmem:[%s2852_s1 + $0x80] sm:$0xff] }
   0x9   :  { %2914 = vst [vmem:[#allocation22_spill] sm:$0xff] %v1951_v14  ;;  %2915 = vst [vmem:[#allocation23_spill] sm:$0xff] %v1956_v15  ;;  %v1966_v17 = vld [vmem:[%s2852_s1 + $0x88] sm:$0xff]  ;;  %v1971_v18 = vld [vmem:[%s2852_s1 + $0x90] sm:$0xff] }
   0xa   :  { %v1976_v19 = vld [vmem:[%s2852_s1 + $0x98] sm:$0xff]  ;;  %v1981_v20 = vld [vmem:[%s2852_s1 + $0xa0] sm:$0xff]  ;;  %v1986_v21 = vld [vmem:[%s2852_s1 + $0xa8] sm:$0xff] }
   0xb   :  { %v1991_v22 = vld [vmem:[%s2852_s1 + $0xb0] sm:$0xff]  ;;  %v1996_v23 = vld [vmem:[%s2852_s1 + $0xb8] sm:$0xff]  ;;  %v2001_v24 = vld [vmem:[%s2852_s1 + $0xc0] sm:$0xff] }
   0xc   :  { %v2006_v25 = vld [vmem:[%s2852_s1 + $0xc8] sm:$0xff]  ;;  %v2011_v26 = vld [vmem:[%s2852_s1 + $0xd0] sm:$0xff]  ;;  %v2016_v27 = vld [vmem:[%s2852_s1 + $0xd8] sm:$0xff] }
   0xd   :  { %v2021_v28 = vld [vmem:[%s2852_s1 + $0xe0] sm:$0xff]  ;;  %v2026_v29 = vld [vmem:[%s2852_s1 + $0xe8] sm:$0xff]  ;;  %v2031_v30 = vld [vmem:[%s2852_s1 + $0xf0] sm:$0xff] }
   0xe   :  { %v2036_v31 = vld [vmem:[%s2852_s1 + $0xf8] sm:$0xff]  ;;  %v2041_v32 = vld [vmem:[%s2852_s1 + $0x100] sm:$0xff]  ;;  %v2046_v33 = vld [vmem:[%s2852_s1 + $0x108] sm:$0xff] }
   0xf   :  { %v2051_v34 = vld [vmem:[%s2852_s1 + $0x110] sm:$0xff]  ;;  %v2056_v35 = vld [vmem:[%s2852_s1 + $0x118] sm:$0xff]  ;;  %v2061_v36 = vld [vmem:[%s2852_s1 + $0x120] sm:$0xff] }
  0x10   :  { %v2066_v37 = vld [vmem:[%s2852_s1 + $0x128] sm:$0xff]  ;;  %v2071_v38 = vld [vmem:[%s2852_s1 + $0x130] sm:$0xff]  ;;  %v2076_v39 = vld [vmem:[%s2852_s1 + $0x138] sm:$0xff] }
  0x11   :  { %v2081_v40 = vld [vmem:[%s2852_s1 + $0x140] sm:$0xff]  ;;  %v2086_v41 = vld [vmem:[%s2852_s1 + $0x148] sm:$0xff]  ;;  %v2091_v42 = vld [vmem:[%s2852_s1 + $0x150] sm:$0xff] }
  0x12   :  { %2916 = vst [vmem:[#allocation24_spill] sm:$0xff] %v2086_v41  ;;  %v2096_v43 = vld [vmem:[%s2852_s1 + $0x158] sm:$0xff]  ;;  %v2101_v44 = vld [vmem:[%s2852_s1 + $0x160] sm:$0xff]  ;;  %v2106_v45 = vld [vmem:[%s2852_s1 + $0x168] sm:$0xff] }
  0x13   :  { %v2111_v46 = vld [vmem:[%s2852_s1 + $0x170] sm:$0xff]  ;;  %v2116_v47 = vld [vmem:[%s2852_s1 + $0x178] sm:$0xff]  ;;  %v2121_v48 = vld [vmem:[%s2852_s1 + $0x180] sm:$0xff] }
  0x14   :  { %v2126_v49 = vld [vmem:[%s2852_s1 + $0x188] sm:$0xff]  ;;  %v2131_v50 = vld [vmem:[%s2852_s1 + $0x190] sm:$0xff]  ;;  %v2136_v51 = vld [vmem:[%s2852_s1 + $0x198] sm:$0xff] }
  0x15   :  { %v2141_v52 = vld [vmem:[%s2852_s1 + $0x1a0] sm:$0xff]  ;;  %v2146_v53 = vld [vmem:[%s2852_s1 + $0x1a8] sm:$0xff]  ;;  %v2151_v54 = vld [vmem:[%s2852_s1 + $0x1b0] sm:$0xff] }
  0x16   :  { %v2156_v55 = vld [vmem:[%s2852_s1 + $0x1b8] sm:$0xff]  ;;  %v2161_v56 = vld [vmem:[%s2852_s1 + $0x1c0] sm:$0xff]  ;;  %v2166_v57 = vld [vmem:[%s2852_s1 + $0x1c8] sm:$0xff] }
  0x17   :  { %v2171_v58 = vld [vmem:[%s2852_s1 + $0x1d0] sm:$0xff]  ;;  %v2176_v59 = vld [vmem:[%s2852_s1 + $0x1d8] sm:$0xff]  ;;  %v2181_v60 = vld [vmem:[%s2852_s1 + $0x1e0] sm:$0xff] }
  0x18   :  { %v2186_v61 = vld [vmem:[%s2852_s1 + $0x1e8] sm:$0xff]  ;;  %v2191_v62 = vld [vmem:[%s2852_s1 + $0x1f0] sm:$0xff]  ;;  %v2196_v63 = vld [vmem:[%s2852_s1 + $0x1f8] sm:$0xff] }
  0x19   :  { %2917 = vst [vmem:[#allocation25_spill] sm:$0xff] %v2186_v61  ;;  %2918 = vst [vmem:[#allocation26_spill] sm:$0xff] %v2196_v63 }
  0x1a   :  { %181 = vsyncadd [#allocation5], 8192  ;;  %258 = vmatprep.subr.mxu0 %v2186_v61  ;;  %329 = vmatprep.subr.mxu1 %v2196_v63 }
  0x1b   :  { %1860 = dma.done.wait [#allocation5], 8192 }
  0x1c   :  { %1861 = vsyncadd [#allocation5], 4294959104  ;;  %259 = vmatpush1.msra.mxu0 %v2181_v60  ;;  %330 = vmatpush1.msra.mxu1 %v2191_v62 }
  0x1d   :  { %260 = vmatprep.subr.mxu0 %v2166_v57  ;;  %331 = vmatprep.subr.mxu1 %v2176_v59 }
  0x1e   :  { %261 = vmatpush1.msra.mxu0 %v2161_v56  ;;  %332 = vmatpush1.msra.mxu1 %v2171_v58 }
  0x1f   :  { %262 = vmatprep.subr.mxu0 %v2146_v53  ;;  %333 = vmatprep.subr.mxu1 %v2156_v55 }
  0x20   :  { %263 = vmatpush1.msra.mxu0 %v2141_v52  ;;  %334 = vmatpush1.msra.mxu1 %v2151_v54 }
  0x21   :  { %264 = vmatprep.subr.mxu0 %v2126_v49  ;;  %335 = vmatprep.subr.mxu1 %v2136_v51 }
  0x22   :  { %265 = vmatpush1.msra.mxu0 %v2121_v48  ;;  %336 = vmatpush1.msra.mxu1 %v2131_v50 }
  0x23   :  { %266 = vmatprep.subr.mxu0 %v2106_v45  ;;  %337 = vmatprep.subr.mxu1 %v2116_v47 }
  0x24   :  { %267 = vmatpush1.msra.mxu0 %v2101_v44  ;;  %338 = vmatpush1.msra.mxu1 %v2111_v46 }
  0x25   :  { %268 = vmatprep.subr.mxu0 %v2086_v41  ;;  %339 = vmatprep.subr.mxu1 %v2096_v43  ;;  %v2856_v41 = vmov 0.0  }
  0x26   :  { %269 = vmatpush1.msra.mxu0 %v2081_v40  ;;  %340 = vmatpush1.msra.mxu1 %v2091_v42 }
  0x27   :  { %270 = vmatprep.subr.mxu0 %v2066_v37  ;;  %341 = vmatprep.subr.mxu1 %v2076_v39 }
  0x28   :  { %271 = vmatpush1.msra.mxu0 %v2061_v36  ;;  %342 = vmatpush1.msra.mxu1 %v2071_v38 }
  0x29   :  { %272 = vmatprep.subr.mxu0 %v2046_v33  ;;  %343 = vmatprep.subr.mxu1 %v2056_v35 }
  0x2a   :  { %273 = vmatpush1.msra.mxu0 %v2041_v32  ;;  %322 = vmatprep.mubr.f32.mxu0 %v2856_v41 }
  0x2b   :  { %274 = vmatprep.subr.mxu0 %v2026_v29  ;;  %344 = vmatpush1.msra.mxu1 %v2051_v34 }
  0x2c   :  { %275 = vmatpush1.msra.mxu0 %v2021_v28  ;;  %345 = vmatprep.subr.mxu1 %v2036_v31 }
  0x2d   :  { %276 = vmatprep.subr.mxu0 %v2006_v25  ;;  %346 = vmatpush1.msra.mxu1 %v2031_v30 }
  0x2e   :  { %277 = vmatpush1.msra.mxu0 %v2001_v24  ;;  %347 = vmatprep.subr.mxu1 %v2016_v27 }
  0x2f   :  { %278 = vmatprep.subr.mxu0 %v1986_v21  ;;  %348 = vmatpush1.msra.mxu1 %v2011_v26 }
  0x30   :  { %279 = vmatpush1.msra.mxu0 %v1981_v20  ;;  %349 = vmatprep.subr.mxu1 %v1996_v23 }
  0x31   :  { %280 = vmatprep.subr.mxu0 %v1966_v17  ;;  %350 = vmatpush1.msra.mxu1 %v1991_v22 }
  0x32   :  { %281 = vmatpush1.msra.mxu0 %v1961_v16  ;;  %351 = vmatprep.subr.mxu1 %v1976_v19 }
  0x33   :  { %282 = vmatprep.subr.mxu0 %v1946_v13  ;;  %352 = vmatpush1.msra.mxu1 %v1971_v18 }
  0x34   :  { %283 = vmatpush1.msra.mxu0 %v1941_v12  ;;  %353 = vmatprep.subr.mxu1 %v1956_v15 }
  0x35   :  { %284 = vmatprep.subr.mxu0 %v1926_v9  ;;  %354 = vmatpush1.msra.mxu1 %v1951_v14 }
  0x36   :  { %285 = vmatpush1.msra.mxu0 %v1921_v8  ;;  %355 = vmatprep.subr.mxu1 %v1936_v11 }
  0x37   :  { %286 = vmatprep.subr.mxu0 %v1906_v5  ;;  %356 = vmatpush1.msra.mxu1 %v1931_v10 }
  0x38   :  { %287 = vmatpush1.msra.mxu0 %v1901_v4  ;;  %357 = vmatprep.subr.mxu1 %v1916_v7 }
  0x39   :  { %288 = vmatprep.subr.mxu0 %v1886_v1  ;;  %358 = vmatpush1.msra.mxu1 %v1911_v6 }
  0x3a   :  { %289 = vmatpush1.msra.mxu0 %v1881_v0  ;;  %359 = vmatprep.subr.mxu1 %v1896_v3 }
  0x3b   :  { %323 = vmatmul.mubr.f32.vlgmr.msra.gmra.mxu0 %v2856_v41  ;;  %360 = vmatpush1.msra.mxu1 %v1891_v2 }
  0x3c   :  { %393 = vmatprep.mubr.f32.mxu1 %v2856_v41  ;;  %433 = vmatprep.subr.mxu0 %v2186_v61 }
  0x3d   :  { %394 = vmatmul.mubr.f32.vlgmr.msra.gmra.mxu1 %v2856_v41  ;;  %504 = vmatprep.subr.mxu1 %v2196_v63  ;;  %v2919_v41 = vld [vmem:[#allocation24_spill] sm:$0xff] }
  0x3e   :  { %434 = vmatpush1.msra.mxu0 %v2181_v60  ;;  %505 = vmatpush1.msra.mxu1 %v2191_v62 }
  0x3f   :  { %435 = vmatprep.subr.mxu0 %v2166_v57  ;;  %506 = vmatprep.subr.mxu1 %v2176_v59 }
  0x40   :  { %436 = vmatpush1.msra.mxu0 %v2161_v56  ;;  %507 = vmatpush1.msra.mxu1 %v2171_v58 }
  0x41   :  { %437 = vmatprep.subr.mxu0 %v2146_v53  ;;  %508 = vmatprep.subr.mxu1 %v2156_v55 }
  0x42   :  { %438 = vmatpush1.msra.mxu0 %v2141_v52  ;;  %509 = vmatpush1.msra.mxu1 %v2151_v54 }
  0x43   :  { %439 = vmatprep.subr.mxu0 %v2126_v49  ;;  %510 = vmatprep.subr.mxu1 %v2136_v51 }
  0x44   :  { %440 = vmatpush1.msra.mxu0 %v2121_v48  ;;  %511 = vmatpush1.msra.mxu1 %v2131_v50 }
  0x45   :  { %441 = vmatprep.subr.mxu0 %v2106_v45  ;;  %512 = vmatprep.subr.mxu1 %v2116_v47 }
  0x46   :  { %442 = vmatpush1.msra.mxu0 %v2101_v44  ;;  %513 = vmatpush1.msra.mxu1 %v2111_v46 }
  0x47   :  { %443 = vmatprep.subr.mxu0 %v2919_v41  ;;  %514 = vmatprep.subr.mxu1 %v2096_v43 }
  0x48   :  { %444 = vmatpush1.msra.mxu0 %v2081_v40  ;;  %515 = vmatpush1.msra.mxu1 %v2091_v42 }
  0x49   :  { %445 = vmatprep.subr.mxu0 %v2066_v37  ;;  %516 = vmatprep.subr.mxu1 %v2076_v39 }
  0x4a   :  { %446 = vmatpush1.msra.mxu0 %v2061_v36  ;;  %517 = vmatpush1.msra.mxu1 %v2071_v38 }
  0x4b   :  { %447 = vmatprep.subr.mxu0 %v2046_v33  ;;  %518 = vmatprep.subr.mxu1 %v2056_v35 }
  0x4c   :  { %448 = vmatpush1.msra.mxu0 %v2041_v32  ;;  %519 = vmatpush1.msra.mxu1 %v2051_v34 }
  0x4d   :  { %449 = vmatprep.subr.mxu0 %v2026_v29  ;;  %520 = vmatprep.subr.mxu1 %v2036_v31 }
  0x4e   :  { %450 = vmatpush1.msra.mxu0 %v2021_v28  ;;  %521 = vmatpush1.msra.mxu1 %v2031_v30 }
  0x4f   :  { %451 = vmatprep.subr.mxu0 %v2006_v25  ;;  %522 = vmatprep.subr.mxu1 %v2016_v27 }
  0x50   :  { %452 = vmatpush1.msra.mxu0 %v2001_v24  ;;  %523 = vmatpush1.msra.mxu1 %v2011_v26 }
  0x51   :  { %453 = vmatprep.subr.mxu0 %v1986_v21  ;;  %524 = vmatprep.subr.mxu1 %v1996_v23 }
  0x52   :  { %454 = vmatpush1.msra.mxu0 %v1981_v20  ;;  %525 = vmatpush1.msra.mxu1 %v1991_v22 }
  0x53   :  { %455 = vmatprep.subr.mxu0 %v1966_v17  ;;  %526 = vmatprep.subr.mxu1 %v1976_v19 }
  0x54   :  { %456 = vmatpush1.msra.mxu0 %v1961_v16  ;;  %527 = vmatpush1.msra.mxu1 %v1971_v18 }
  0x55   :  { %457 = vmatprep.subr.mxu0 %v1946_v13  ;;  %528 = vmatprep.subr.mxu1 %v1956_v15 }
  0x56   :  { %458 = vmatpush1.msra.mxu0 %v1941_v12  ;;  %529 = vmatpush1.msra.mxu1 %v1951_v14 }
  0x57   :  { %459 = vmatprep.subr.mxu0 %v1926_v9  ;;  %530 = vmatprep.subr.mxu1 %v1936_v11  ;;  %v2920_v9 = vmov 0.0  }
  0x58   :  { %460 = vmatpush1.msra.mxu0 %v1921_v8  ;;  %531 = vmatpush1.msra.mxu1 %v1931_v10  ;;  %v257_v10 = vld [vmem:[%s2851_s0 + $0x18] sm:$0xff] }
  0x59   :  { %461 = vmatprep.subr.mxu0 %v1906_v5  ;;  %532 = vmatprep.subr.mxu1 %v1916_v7 }
  0x5a   :  { %462 = vmatpush1.msra.mxu0 %v1901_v4  ;;  %533 = vmatpush1.msra.mxu1 %v1911_v6  ;;  %v254_v6 = vld [vmem:[%s2851_s0] sm:$0xff] }
  0x5b   :  { %463 = vmatprep.subr.mxu0 %v1886_v1  ;;  %534 = vmatprep.subr.mxu1 %v1896_v3  ;;  %v255_v3 = vld [vmem:[%s2851_s0 + $0x8] sm:$0xff] }
  0x5c   :  { %464 = vmatpush1.msra.mxu0 %v1881_v0  ;;  %497 = vmatprep.mubr.f32.mxu0 %v2920_v9 }
  0x5d   :  { %535 = vmatpush1.msra.mxu1 %v1891_v2  ;;  %568 = vmatprep.mubr.f32.mxu1 %v2920_v9 }
  0x5e   :  { %608 = vmatprep.subr.mxu0 %v2186_v61  ;;  %679 = vmatprep.subr.mxu1 %v2196_v63  ;;  %v256_v63 = vld [vmem:[%s2851_s0 + $0x10] sm:$0xff] }
  0xfb   :  { %v324_v4 = vpop.f32.mrf.mxu0 }
  0xfc   :  { %v400_v0 = vadd.f32 %v324_v4, %v254_v6 }
  0xfd   :  { %v326_v1 = vpop.f32.mrf.mxu0  ;;  %v395_v61 = vpop.f32.mrf.mxu1 }
  0xfe   :  { %v1678_v7 = vmul.f32 -1.442695, %v400_v0  ;;  %v401_v5 = vadd.f32 %v326_v1, %v255_v3  ;;  %v402_v9 = vadd.f32 %v395_v61, %v256_v63 }
  0xff   :  { %v397_v8 = vpop.f32.mrf.mxu1 }
 0x100   :  { %1732 = vpow2.f32 %v1678_v7  ;;  %v1679_v2 = vmul.f32 -1.442695, %v401_v5  ;;  %v1680_v11 = vmul.f32 -1.442695, %v402_v9  ;;  %v403_v14 = vadd.f32 %v397_v8, %v257_v10 }
 0x102   :  { %1734 = vpow2.f32 %v1679_v2 }
 0x103   :  { %1736 = vpow2.f32 %v1680_v11  ;;  %v2921_v11 = vld [vmem:[#allocation23_spill] sm:$0xff] }
 0x104   :  { %1738 = vtanh.f32 %v403_v14  ;;  %v2923_v14 = vld [vmem:[#allocation22_spill] sm:$0xff] }
 0x10d   :  { %v1733_v4 = vpop.eup %1732 }
 0x10e   :  { %v413_v6 = vadd.f32 1.0, %v1733_v4  ;;  %v2924_v4 = vld [vmem:[#allocation17_spill] sm:$0xff] }
 0x10f   :  { %v1735_v0 = vpop.eup %1734 }
 0x110   :  { %1740 = vrcp.f32 %v413_v6  ;;  %v414_v1 = vadd.f32 1.0, %v1735_v0  ;;  %v1737_v2 = vpop.eup %1736  ;;  %v2925_v6 = vld [vmem:[#allocation19_spill] sm:$0xff]  ;;  %v2926_v0 = vld [vmem:[#allocation16_spill] sm:$0xff] }
 0x111   :  { %v1739_v3 = vpop.eup %1738  ;;  %v415_v61 = vadd.f32 1.0, %v1737_v2  ;;  %v2928_v2 = vld [vmem:[#allocation13_spill] sm:$0xff] }
 0x112   :  { %1742 = vrcp.f32 %v414_v1  ;;  %v2927_v1 = vld [vmem:[#allocation18_spill] sm:$0xff] }
 0x113   :  { %1744 = vrcp.f32 %v415_v61  ;;  %v2932_v61 = vld [vmem:[#allocation9_spill] sm:$0xff] }
 0x11d   :  { %v1741_v5 = vpop.eup %1740 }
 0x11e   :  { %v424_v12 = vmul.f32 %v1741_v5, %v1739_v3  ;;  %v2929_v3 = vld [vmem:[#allocation15_spill] sm:$0xff]  ;;  %v2930_v5 = vld [vmem:[#allocation12_spill] sm:$0xff] }
 0x11f   :  { %v1743_v7 = vpop.eup %1742 }
 0x120   :  { %v423_v63 = vmul.f32 0.0, %v1743_v7  ;;  %v1745_v8 = vpop.eup %1744  ;;  %v2931_v7 = vld [vmem:[#allocation14_spill] sm:$0xff] }
 0x122   :  { %v2346_v15 = vadd.f32 %v424_v12, %v423_v63  ;;  %v2922_v12 = vld [vmem:[#allocation20_spill] sm:$0xff]  ;;  %v2933_v63 = vld [vmem:[#allocation11_spill] sm:$0xff] }
 0x124   :  { %1746 = vtanh.f32 %v2346_v15 }
 0x131   :  { %v1747_v9 = vpop.eup %1746 }
 0x132   :  { %v427_v10 = vmul.f32 %v1747_v9, %v1745_v8  ;;  %v2934_v8 = vld [vmem:[#allocation8_spill] sm:$0xff]  ;;  %v2935_v9 = vmov 0.0  }
 0x134   :  { %498 = vmatmul.mubr.f32.vlgmr.msra.gmra.mxu0 %v427_v10  ;;  %569 = vmatmul.mubr.f32.vlgmr.msra.gmra.mxu1 %v427_v10  ;;  %v2936_v10 = vld [vmem:[#allocation10_spill] sm:$0xff] }
 0x135   :  { %609 = vmatpush1.msra.mxu0 %v2181_v60  ;;  %680 = vmatpush1.msra.mxu1 %v2191_v62 }
 0x136   :  { %610 = vmatprep.subr.mxu0 %v2166_v57  ;;  %681 = vmatprep.subr.mxu1 %v2176_v59 }
 0x137   :  { %611 = vmatpush1.msra.mxu0 %v2161_v56  ;;  %682 = vmatpush1.msra.mxu1 %v2171_v58 }
 0x138   :  { %612 = vmatprep.subr.mxu0 %v2146_v53  ;;  %683 = vmatprep.subr.mxu1 %v2156_v55 }
 0x139   :  { %613 = vmatpush1.msra.mxu0 %v2141_v52  ;;  %684 = vmatpush1.msra.mxu1 %v2151_v54 }
 0x13a   :  { %614 = vmatprep.subr.mxu0 %v2126_v49  ;;  %685 = vmatprep.subr.mxu1 %v2136_v51 }
 0x13b   :  { %615 = vmatpush1.msra.mxu0 %v2121_v48  ;;  %686 = vmatpush1.msra.mxu1 %v2131_v50 }
 0x13c   :  { %616 = vmatprep.subr.mxu0 %v2106_v45  ;;  %687 = vmatprep.subr.mxu1 %v2116_v47 }
 0x13d   :  { %617 = vmatpush1.msra.mxu0 %v2101_v44  ;;  %688 = vmatpush1.msra.mxu1 %v2111_v46 }
 0x13e   :  { %618 = vmatprep.subr.mxu0 %v2919_v41  ;;  %689 = vmatprep.subr.mxu1 %v2096_v43 }
 0x13f   :  { %619 = vmatpush1.msra.mxu0 %v2081_v40  ;;  %690 = vmatpush1.msra.mxu1 %v2091_v42 }
 0x140   :  { %620 = vmatprep.subr.mxu0 %v2066_v37  ;;  %691 = vmatprep.subr.mxu1 %v2076_v39 }
 0x141   :  { %621 = vmatpush1.msra.mxu0 %v2061_v36  ;;  %692 = vmatpush1.msra.mxu1 %v2071_v38 }
 0x142   :  { %622 = vmatprep.subr.mxu0 %v2046_v33  ;;  %693 = vmatprep.subr.mxu1 %v2056_v35 }
 0x143   :  { %623 = vmatpush1.msra.mxu0 %v2041_v32  ;;  %694 = vmatpush1.msra.mxu1 %v2051_v34 }
 0x144   :  { %624 = vmatprep.subr.mxu0 %v2026_v29  ;;  %695 = vmatprep.subr.mxu1 %v2036_v31 }
 0x145   :  { %625 = vmatpush1.msra.mxu0 %v2021_v28  ;;  %696 = vmatpush1.msra.mxu1 %v2031_v30 }
 0x146   :  { %626 = vmatprep.subr.mxu0 %v2006_v25  ;;  %697 = vmatprep.subr.mxu1 %v2016_v27 }
 0x147   :  { %627 = vmatpush1.msra.mxu0 %v2001_v24  ;;  %698 = vmatpush1.msra.mxu1 %v2011_v26 }
 0x148   :  { %628 = vmatprep.subr.mxu0 %v1986_v21  ;;  %699 = vmatprep.subr.mxu1 %v1996_v23 }
 0x149   :  { %629 = vmatpush1.msra.mxu0 %v1981_v20  ;;  %700 = vmatpush1.msra.mxu1 %v1991_v22 }
 0x14a   :  { %630 = vmatprep.subr.mxu0 %v1966_v17  ;;  %701 = vmatprep.subr.mxu1 %v1976_v19 }
 0x14b   :  { %631 = vmatpush1.msra.mxu0 %v1961_v16  ;;  %702 = vmatpush1.msra.mxu1 %v1971_v18 }
 0x14c   :  { %632 = vmatprep.subr.mxu0 %v1946_v13  ;;  %703 = vmatprep.subr.mxu1 %v2921_v11 }
 0x14d   :  { %633 = vmatpush1.msra.mxu0 %v2922_v12  ;;  %704 = vmatpush1.msra.mxu1 %v2923_v14 }
 0x14e   :  { %634 = vmatprep.subr.mxu0 %v2924_v4  ;;  %705 = vmatprep.subr.mxu1 %v2925_v6  ;;  %v1684_v6 = vld [vmem:[%s2851_s0 + $0x38] sm:$0xff] }
 0x14f   :  { %635 = vmatpush1.msra.mxu0 %v2926_v0  ;;  %706 = vmatpush1.msra.mxu1 %v2927_v1  ;;  %v2937_v1 = vld [vmem:[#allocation25_spill] sm:$0xff] }
 0x150   :  { %636 = vmatprep.subr.mxu0 %v2928_v2  ;;  %707 = vmatprep.subr.mxu1 %v2929_v3  ;;  %v2938_v2 = vld [vmem:[#allocation26_spill] sm:$0xff] }
 0x151   :  { %637 = vmatpush1.msra.mxu0 %v2930_v5  ;;  %708 = vmatpush1.msra.mxu1 %v2931_v7  ;;  %v1681_v7 = vld [vmem:[%s2851_s0 + $0x20] sm:$0xff] }
 0x152   :  { %638 = vmatprep.subr.mxu0 %v2932_v61  ;;  %709 = vmatprep.subr.mxu1 %v2933_v63  ;;  %v1682_v63 = vld [vmem:[%s2851_s0 + $0x28] sm:$0xff] }
 0x153   :  { %639 = vmatpush1.msra.mxu0 %v2934_v8  ;;  %672 = vmatprep.mubr.f32.mxu0 %v2935_v9 }
 0x154   :  { %710 = vmatpush1.msra.mxu1 %v2936_v10  ;;  %743 = vmatprep.mubr.f32.mxu1 %v2935_v9 }
 0x155   :  { %783 = vmatprep.subr.mxu0 %v2937_v1  ;;  %854 = vmatprep.subr.mxu1 %v2938_v2  ;;  %v1683_v2 = vld [vmem:[%s2851_s0 + $0x30] sm:$0xff] }
 0x1f4   :  { %v499_v5 = vpop.f32.mrf.mxu0  ;;  %v570_v1 = vpop.f32.mrf.mxu1 }
 0x1f5   :  { %v575_v8 = vadd.f32 %v1681_v7, %v499_v5  ;;  %v577_v9 = vadd.f32 %v1683_v2, %v570_v1 }
 0x1f6   :  { %v501_v61 = vpop.f32.mrf.mxu0  ;;  %v572_v4 = vpop.f32.mrf.mxu1 }
 0x1f7   :  { %v1685_v3 = vmul.f32 -1.442695, %v575_v8  ;;  %v576_v0 = vadd.f32 %v1682_v63, %v501_v61  ;;  %v1687_v14 = vmul.f32 -1.442695, %v577_v9  ;;  %v578_v5 = vadd.f32 %v1684_v6, %v572_v4  ;;  %v2941_v6 = vld [vmem:[#allocation20_spill] sm:$0xff]  ;;  %v2942_v9 = vld [vmem:[#allocation22_spill] sm:$0xff] }
 0x1f9   :  { %1748 = vpow2.f32 %v1685_v3  ;;  %v1686_v10 = vmul.f32 -1.442695, %v576_v0 }
 0x1fb   :  { %1750 = vpow2.f32 %v1686_v10 }
 0x1fc   :  { %1752 = vpow2.f32 %v1687_v14 }
 0x206   :  { %v1749_v12 = vpop.eup %1748 }
 0x207   :  { %v588_v7 = vadd.f32 1.0, %v1749_v12 }
 0x208   :  { %v1751_v8 = vpop.eup %1750 }
 0x209   :  { %1754 = vrcp.f32 %v588_v7  ;;  %v589_v0 = vadd.f32 1.0, %v1751_v8  ;;  %v1753_v3 = vpop.eup %1752  ;;  %v2944_v7 = vld [vmem:[#allocation19_spill] sm:$0xff]  ;;  %v2945_v8 = vld [vmem:[#allocation16_spill] sm:$0xff] }
 0x20a   :  { %1756 = vtanh.f32 %v578_v5  ;;  %v590_v1 = vadd.f32 1.0, %v1753_v3  ;;  %v2943_v5 = vld [vmem:[#allocation17_spill] sm:$0xff] }
 0x20b   :  { %1758 = vrcp.f32 %v589_v0  ;;  %v2946_v0 = vld [vmem:[#allocation18_spill] sm:$0xff]  ;;  %v2947_v3 = vld [vmem:[#allocation13_spill] sm:$0xff] }
 0x20c   :  { %1760 = vrcp.f32 %v590_v1  ;;  %v2951_v1 = vld [vmem:[#allocation9_spill] sm:$0xff] }
 0x216   :  { %v1755_v61 = vpop.eup %1754 }
 0x217   :  { %v1757_v63 = vpop.eup %1756 }
 0x218   :  { %v1759_v10 = vpop.eup %1758  ;;  %v599_v11 = vmul.f32 %v1757_v63, %v1755_v61  ;;  %v2948_v61 = vld [vmem:[#allocation15_spill] sm:$0xff]  ;;  %v2949_v63 = vld [vmem:[#allocation12_spill] sm:$0xff] }
 0x219   :  { %v598_v2 = vmul.f32 %v1759_v10, %v2346_v15  ;;  %v1761_v12 = vpop.eup %1760  ;;  %v2939_v15 = vld [vmem:[#allocation21_spill] sm:$0xff]  ;;  %v2950_v10 = vld [vmem:[#allocation14_spill] sm:$0xff] }
 0x21b   :  { %v2428_v13 = vadd.f32 %v599_v11, %v598_v2  ;;  %v2940_v11 = vld [vmem:[#allocation23_spill] sm:$0xff] }
 0x21c   :  { %v2952_v2 = vld [vmem:[#allocation11_spill] sm:$0xff] }
 0x21d   :  { %1762 = vtanh.f32 %v2428_v13 }
 0x22a   :  { %v1763_v4 = vpop.eup %1762 }
 0x22b   :  { %v602_v14 = vmul.f32 %v1763_v4, %v1761_v12  ;;  %v2953_v12 = vld [vmem:[#allocation8_spill] sm:$0xff]  ;;  %v2954_v4 = vmov 0.0  }
 0x22d   :  { %673 = vmatmul.mubr.f32.vlgmr.msra.gmra.mxu0 %v602_v14  ;;  %744 = vmatmul.mubr.f32.vlgmr.msra.gmra.mxu1 %v602_v14  ;;  %v2955_v14 = vld [vmem:[#allocation10_spill] sm:$0xff] }
 0x22e   :  { %784 = vmatpush1.msra.mxu0 %v2181_v60  ;;  %855 = vmatpush1.msra.mxu1 %v2191_v62 }
 0x22f   :  { %785 = vmatprep.subr.mxu0 %v2166_v57  ;;  %856 = vmatprep.subr.mxu1 %v2176_v59 }
 0x230   :  { %786 = vmatpush1.msra.mxu0 %v2161_v56  ;;  %857 = vmatpush1.msra.mxu1 %v2171_v58 }
 0x231   :  { %787 = vmatprep.subr.mxu0 %v2146_v53  ;;  %858 = vmatprep.subr.mxu1 %v2156_v55 }
 0x232   :  { %788 = vmatpush1.msra.mxu0 %v2141_v52  ;;  %859 = vmatpush1.msra.mxu1 %v2151_v54 }
 0x233   :  { %789 = vmatprep.subr.mxu0 %v2126_v49  ;;  %860 = vmatprep.subr.mxu1 %v2136_v51 }
 0x234   :  { %790 = vmatpush1.msra.mxu0 %v2121_v48  ;;  %861 = vmatpush1.msra.mxu1 %v2131_v50 }
 0x235   :  { %791 = vmatprep.subr.mxu0 %v2106_v45  ;;  %862 = vmatprep.subr.mxu1 %v2116_v47 }
 0x236   :  { %792 = vmatpush1.msra.mxu0 %v2101_v44  ;;  %863 = vmatpush1.msra.mxu1 %v2111_v46 }
 0x237   :  { %793 = vmatprep.subr.mxu0 %v2919_v41  ;;  %864 = vmatprep.subr.mxu1 %v2096_v43 }
 0x238   :  { %794 = vmatpush1.msra.mxu0 %v2081_v40  ;;  %865 = vmatpush1.msra.mxu1 %v2091_v42 }
 0x239   :  { %795 = vmatprep.subr.mxu0 %v2066_v37  ;;  %866 = vmatprep.subr.mxu1 %v2076_v39 }
 0x23a   :  { %796 = vmatpush1.msra.mxu0 %v2061_v36  ;;  %867 = vmatpush1.msra.mxu1 %v2071_v38 }
 0x23b   :  { %797 = vmatprep.subr.mxu0 %v2046_v33  ;;  %868 = vmatprep.subr.mxu1 %v2056_v35 }
 0x23c   :  { %798 = vmatpush1.msra.mxu0 %v2041_v32  ;;  %869 = vmatpush1.msra.mxu1 %v2051_v34 }
 0x23d   :  { %799 = vmatprep.subr.mxu0 %v2026_v29  ;;  %870 = vmatprep.subr.mxu1 %v2036_v31 }
 0x23e   :  { %800 = vmatpush1.msra.mxu0 %v2021_v28  ;;  %871 = vmatpush1.msra.mxu1 %v2031_v30 }
 0x23f   :  { %801 = vmatprep.subr.mxu0 %v2006_v25  ;;  %872 = vmatprep.subr.mxu1 %v2016_v27 }
 0x240   :  { %802 = vmatpush1.msra.mxu0 %v2001_v24  ;;  %873 = vmatpush1.msra.mxu1 %v2011_v26 }
 0x241   :  { %803 = vmatprep.subr.mxu0 %v1986_v21  ;;  %874 = vmatprep.subr.mxu1 %v1996_v23 }
 0x242   :  { %804 = vmatpush1.msra.mxu0 %v1981_v20  ;;  %875 = vmatpush1.msra.mxu1 %v1991_v22 }
 0x243   :  { %805 = vmatprep.subr.mxu0 %v1966_v17  ;;  %876 = vmatprep.subr.mxu1 %v1976_v19 }
 0x244   :  { %806 = vmatpush1.msra.mxu0 %v1961_v16  ;;  %877 = vmatpush1.msra.mxu1 %v1971_v18 }
 0x245   :  { %807 = vmatprep.subr.mxu0 %v2939_v15  ;;  %878 = vmatprep.subr.mxu1 %v2940_v11 }
 0x246   :  { %808 = vmatpush1.msra.mxu0 %v2941_v6  ;;  %879 = vmatpush1.msra.mxu1 %v2942_v9 }
 0x247   :  { %809 = vmatprep.subr.mxu0 %v2943_v5  ;;  %880 = vmatprep.subr.mxu1 %v2944_v7  ;;  %v1691_v7 = vld [vmem:[%s2851_s0 + $0x58] sm:$0xff] }
 0x248   :  { %810 = vmatpush1.msra.mxu0 %v2945_v8  ;;  %881 = vmatpush1.msra.mxu1 %v2946_v0  ;;  %v2956_v0 = vld [vmem:[#allocation25_spill] sm:$0xff] }
 0x249   :  { %811 = vmatprep.subr.mxu0 %v2947_v3  ;;  %882 = vmatprep.subr.mxu1 %v2948_v61  ;;  %v2957_v3 = vld [vmem:[#allocation26_spill] sm:$0xff] }
 0x24a   :  { %812 = vmatpush1.msra.mxu0 %v2949_v63  ;;  %883 = vmatpush1.msra.mxu1 %v2950_v10  ;;  %v1688_v10 = vld [vmem:[%s2851_s0 + $0x40] sm:$0xff] }
 0x24b   :  { %813 = vmatprep.subr.mxu0 %v2951_v1  ;;  %884 = vmatprep.subr.mxu1 %v2952_v2  ;;  %v1689_v2 = vld [vmem:[%s2851_s0 + $0x48] sm:$0xff] }
 0x24c   :  { %814 = vmatpush1.msra.mxu0 %v2953_v12  ;;  %847 = vmatprep.mubr.f32.mxu0 %v2954_v4 }
 0x24d   :  { %885 = vmatpush1.msra.mxu1 %v2955_v14  ;;  %918 = vmatprep.mubr.f32.mxu1 %v2954_v4 }
 0x24e   :  { %958 = vmatprep.subr.mxu0 %v2956_v0  ;;  %1029 = vmatprep.subr.mxu1 %v2957_v3  ;;  %v1690_v3 = vld [vmem:[%s2851_s0 + $0x50] sm:$0xff] }
 0x2ed   :  { %v674_v63 = vpop.f32.mrf.mxu0  ;;  %v745_v0 = vpop.f32.mrf.mxu1 }
 0x2ee   :  { %v750_v12 = vadd.f32 %v1688_v10, %v674_v63  ;;  %v752_v4 = vadd.f32 %v1690_v3, %v745_v0 }
 0x2ef   :  { %v676_v1 = vpop.f32.mrf.mxu0  ;;  %v747_v5 = vpop.f32.mrf.mxu1 }
 0x2f0   :  { %v1692_v61 = vmul.f32 -1.442695, %v750_v12  ;;  %v751_v8 = vadd.f32 %v1689_v2, %v676_v1  ;;  %v1694_v9 = vmul.f32 -1.442695, %v752_v4  ;;  %v753_v63 = vadd.f32 %v1691_v7, %v747_v5  ;;  %v2960_v7 = vld [vmem:[#allocation20_spill] sm:$0xff]  ;;  %v2961_v4 = vld [vmem:[#allocation22_spill] sm:$0xff] }
 0x2f2   :  { %1764 = vpow2.f32 %v1692_v61  ;;  %v1693_v14 = vmul.f32 -1.442695, %v751_v8 }
 0x2f4   :  { %1766 = vpow2.f32 %v1693_v14 }
 0x2f5   :  { %1768 = vpow2.f32 %v1694_v9 }
 0x2ff   :  { %v1765_v6 = vpop.eup %1764 }
 0x300   :  { %v763_v10 = vadd.f32 1.0, %v1765_v6 }
 0x301   :  { %v1767_v12 = vpop.eup %1766 }
 0x302   :  { %1770 = vrcp.f32 %v763_v10  ;;  %v764_v8 = vadd.f32 1.0, %v1767_v12  ;;  %v1769_v61 = vpop.eup %1768  ;;  %v2963_v10 = vld [vmem:[#allocation19_spill] sm:$0xff]  ;;  %v2964_v12 = vld [vmem:[#allocation16_spill] sm:$0xff] }
 0x303   :  { %1772 = vtanh.f32 %v753_v63  ;;  %v765_v0 = vadd.f32 1.0, %v1769_v61  ;;  %v2962_v63 = vld [vmem:[#allocation17_spill] sm:$0xff] }
 0x304   :  { %1774 = vrcp.f32 %v764_v8  ;;  %v2965_v8 = vld [vmem:[#allocation18_spill] sm:$0xff]  ;;  %v2966_v61 = vld [vmem:[#allocation13_spill] sm:$0xff] }
 0x305   :  { %1776 = vrcp.f32 %v765_v0  ;;  %v2970_v0 = vld [vmem:[#allocation9_spill] sm:$0xff] }
 0x30f   :  { %v1771_v1 = vpop.eup %1770 }
 0x310   :  { %v1773_v2 = vpop.eup %1772 }
 0x311   :  { %v1775_v14 = vpop.eup %1774  ;;  %v774_v11 = vmul.f32 %v1773_v2, %v1771_v1  ;;  %v2967_v1 = vld [vmem:[#allocation15_spill] sm:$0xff]  ;;  %v2968_v2 = vld [vmem:[#allocation12_spill] sm:$0xff] }
 0x312   :  { %v773_v3 = vmul.f32 %v1775_v14, %v2428_v13  ;;  %v1777_v6 = vpop.eup %1776  ;;  %v2958_v13 = vld [vmem:[#allocation21_spill] sm:$0xff]  ;;  %v2969_v14 = vld [vmem:[#allocation14_spill] sm:$0xff] }
 0x314   :  { %v2510_v15 = vadd.f32 %v774_v11, %v773_v3  ;;  %v2959_v11 = vld [vmem:[#allocation23_spill] sm:$0xff] }
 0x315   :  { %v2971_v3 = vld [vmem:[#allocation11_spill] sm:$0xff] }
 0x316   :  { %1778 = vtanh.f32 %v2510_v15 }
 0x323   :  { %v1779_v5 = vpop.eup %1778 }
 0x324   :  { %v777_v9 = vmul.f32 %v1779_v5, %v1777_v6  ;;  %v2972_v6 = vld [vmem:[#allocation8_spill] sm:$0xff]  ;;  %v2973_v5 = vmov 0.0  }
 0x326   :  { %848 = vmatmul.mubr.f32.vlgmr.msra.gmra.mxu0 %v777_v9  ;;  %919 = vmatmul.mubr.f32.vlgmr.msra.gmra.mxu1 %v777_v9  ;;  %v2974_v9 = vld [vmem:[#allocation10_spill] sm:$0xff] }
 0x327   :  { %959 = vmatpush1.msra.mxu0 %v2181_v60  ;;  %1030 = vmatpush1.msra.mxu1 %v2191_v62 }
 0x328   :  { %960 = vmatprep.subr.mxu0 %v2166_v57  ;;  %1031 = vmatprep.subr.mxu1 %v2176_v59 }
 0x329   :  { %961 = vmatpush1.msra.mxu0 %v2161_v56  ;;  %1032 = vmatpush1.msra.mxu1 %v2171_v58 }
 0x32a   :  { %962 = vmatprep.subr.mxu0 %v2146_v53  ;;  %1033 = vmatprep.subr.mxu1 %v2156_v55 }
 0x32b   :  { %963 = vmatpush1.msra.mxu0 %v2141_v52  ;;  %1034 = vmatpush1.msra.mxu1 %v2151_v54 }
 0x32c   :  { %964 = vmatprep.subr.mxu0 %v2126_v49  ;;  %1035 = vmatprep.subr.mxu1 %v2136_v51 }
 0x32d   :  { %965 = vmatpush1.msra.mxu0 %v2121_v48  ;;  %1036 = vmatpush1.msra.mxu1 %v2131_v50 }
 0x32e   :  { %966 = vmatprep.subr.mxu0 %v2106_v45  ;;  %1037 = vmatprep.subr.mxu1 %v2116_v47 }
 0x32f   :  { %967 = vmatpush1.msra.mxu0 %v2101_v44  ;;  %1038 = vmatpush1.msra.mxu1 %v2111_v46 }
 0x330   :  { %968 = vmatprep.subr.mxu0 %v2919_v41  ;;  %1039 = vmatprep.subr.mxu1 %v2096_v43 }
 0x331   :  { %969 = vmatpush1.msra.mxu0 %v2081_v40  ;;  %1040 = vmatpush1.msra.mxu1 %v2091_v42 }
 0x332   :  { %970 = vmatprep.subr.mxu0 %v2066_v37  ;;  %1041 = vmatprep.subr.mxu1 %v2076_v39 }
 0x333   :  { %971 = vmatpush1.msra.mxu0 %v2061_v36  ;;  %1042 = vmatpush1.msra.mxu1 %v2071_v38 }
 0x334   :  { %972 = vmatprep.subr.mxu0 %v2046_v33  ;;  %1043 = vmatprep.subr.mxu1 %v2056_v35 }
 0x335   :  { %973 = vmatpush1.msra.mxu0 %v2041_v32  ;;  %1044 = vmatpush1.msra.mxu1 %v2051_v34 }
 0x336   :  { %974 = vmatprep.subr.mxu0 %v2026_v29  ;;  %1045 = vmatprep.subr.mxu1 %v2036_v31 }
 0x337   :  { %975 = vmatpush1.msra.mxu0 %v2021_v28  ;;  %1046 = vmatpush1.msra.mxu1 %v2031_v30 }
 0x338   :  { %976 = vmatprep.subr.mxu0 %v2006_v25  ;;  %1047 = vmatprep.subr.mxu1 %v2016_v27 }
 0x339   :  { %977 = vmatpush1.msra.mxu0 %v2001_v24  ;;  %1048 = vmatpush1.msra.mxu1 %v2011_v26 }
 0x33a   :  { %978 = vmatprep.subr.mxu0 %v1986_v21  ;;  %1049 = vmatprep.subr.mxu1 %v1996_v23 }
 0x33b   :  { %979 = vmatpush1.msra.mxu0 %v1981_v20  ;;  %1050 = vmatpush1.msra.mxu1 %v1991_v22 }
 0x33c   :  { %980 = vmatprep.subr.mxu0 %v1966_v17  ;;  %1051 = vmatprep.subr.mxu1 %v1976_v19 }
 0x33d   :  { %981 = vmatpush1.msra.mxu0 %v1961_v16  ;;  %1052 = vmatpush1.msra.mxu1 %v1971_v18 }
 0x33e   :  { %982 = vmatprep.subr.mxu0 %v2958_v13  ;;  %1053 = vmatprep.subr.mxu1 %v2959_v11 }
 0x33f   :  { %983 = vmatpush1.msra.mxu0 %v2960_v7  ;;  %1054 = vmatpush1.msra.mxu1 %v2961_v4 }
 0x340   :  { %984 = vmatprep.subr.mxu0 %v2962_v63  ;;  %1055 = vmatprep.subr.mxu1 %v2963_v10  ;;  %v1698_v10 = vld [vmem:[%s2851_s0 + $0x78] sm:$0xff] }
 0x341   :  { %985 = vmatpush1.msra.mxu0 %v2964_v12  ;;  %1056 = vmatpush1.msra.mxu1 %v2965_v8  ;;  %v2975_v8 = vld [vmem:[#allocation25_spill] sm:$0xff] }
 0x342   :  { %986 = vmatprep.subr.mxu0 %v2966_v61  ;;  %1057 = vmatprep.subr.mxu1 %v2967_v1  ;;  %v2976_v61 = vld [vmem:[#allocation26_spill] sm:$0xff] }
 0x343   :  { %987 = vmatpush1.msra.mxu0 %v2968_v2  ;;  %1058 = vmatpush1.msra.mxu1 %v2969_v14  ;;  %v1695_v14 = vld [vmem:[%s2851_s0 + $0x60] sm:$0xff] }
 0x344   :  { %988 = vmatprep.subr.mxu0 %v2970_v0  ;;  %1059 = vmatprep.subr.mxu1 %v2971_v3  ;;  %v1696_v3 = vld [vmem:[%s2851_s0 + $0x68] sm:$0xff] }
 0x345   :  { %989 = vmatpush1.msra.mxu0 %v2972_v6  ;;  %1022 = vmatprep.mubr.f32.mxu0 %v2973_v5 }
 0x346   :  { %1060 = vmatpush1.msra.mxu1 %v2974_v9  ;;  %1093 = vmatprep.mubr.f32.mxu1 %v2973_v5 }
 0x347   :  { %1133 = vmatprep.subr.mxu0 %v2975_v8  ;;  %1204 = vmatprep.subr.mxu1 %v2976_v61  ;;  %v1697_v61 = vld [vmem:[%s2851_s0 + $0x70] sm:$0xff] }
 0x3e6   :  { %v849_v2 = vpop.f32.mrf.mxu0  ;;  %v920_v8 = vpop.f32.mrf.mxu1 }
 0x3e7   :  { %v925_v6 = vadd.f32 %v1695_v14, %v849_v2  ;;  %v927_v5 = vadd.f32 %v1697_v61, %v920_v8 }
 0x3e8   :  { %v851_v0 = vpop.f32.mrf.mxu0  ;;  %v922_v63 = vpop.f32.mrf.mxu1 }
 0x3e9   :  { %v1699_v1 = vmul.f32 -1.442695, %v925_v6  ;;  %v926_v12 = vadd.f32 %v1696_v3, %v851_v0  ;;  %v1701_v4 = vmul.f32 -1.442695, %v927_v5  ;;  %v928_v2 = vadd.f32 %v1698_v10, %v922_v63  ;;  %v2979_v10 = vld [vmem:[#allocation20_spill] sm:$0xff]  ;;  %v2980_v5 = vld [vmem:[#allocation22_spill] sm:$0xff] }
 0x3eb   :  { %1780 = vpow2.f32 %v1699_v1  ;;  %v1700_v9 = vmul.f32 -1.442695, %v926_v12 }
 0x3ed   :  { %1782 = vpow2.f32 %v1700_v9 }
 0x3ee   :  { %1784 = vpow2.f32 %v1701_v4 }
 0x3f8   :  { %v1781_v7 = vpop.eup %1780 }
 0x3f9   :  { %v938_v14 = vadd.f32 1.0, %v1781_v7 }
 0x3fa   :  { %v1783_v6 = vpop.eup %1782 }
 0x3fb   :  { %1786 = vrcp.f32 %v938_v14  ;;  %v939_v12 = vadd.f32 1.0, %v1783_v6  ;;  %v1785_v1 = vpop.eup %1784  ;;  %v2982_v14 = vld [vmem:[#allocation19_spill] sm:$0xff]  ;;  %v2983_v6 = vld [vmem:[#allocation16_spill] sm:$0xff] }
 0x3fc   :  { %1788 = vtanh.f32 %v928_v2  ;;  %v940_v8 = vadd.f32 1.0, %v1785_v1  ;;  %v2981_v2 = vld [vmem:[#allocation17_spill] sm:$0xff] }
 0x3fd   :  { %1790 = vrcp.f32 %v939_v12  ;;  %v2984_v12 = vld [vmem:[#allocation18_spill] sm:$0xff]  ;;  %v2985_v1 = vld [vmem:[#allocation13_spill] sm:$0xff] }
 0x3fe   :  { %1792 = vrcp.f32 %v940_v8  ;;  %v2989_v8 = vld [vmem:[#allocation9_spill] sm:$0xff] }
 0x408   :  { %v1787_v0 = vpop.eup %1786 }
 0x409   :  { %v1789_v3 = vpop.eup %1788 }
 0x40a   :  { %v1791_v9 = vpop.eup %1790  ;;  %v949_v11 = vmul.f32 %v1789_v3, %v1787_v0  ;;  %v2986_v0 = vld [vmem:[#allocation15_spill] sm:$0xff]  ;;  %v2987_v3 = vld [vmem:[#allocation12_spill] sm:$0xff] }
 0x40b   :  { %v948_v61 = vmul.f32 %v1791_v9, %v2510_v15  ;;  %v1793_v7 = vpop.eup %1792  ;;  %v2977_v15 = vld [vmem:[#allocation21_spill] sm:$0xff]  ;;  %v2988_v9 = vld [vmem:[#allocation14_spill] sm:$0xff] }
 0x40d   :  { %v2592_v13 = vadd.f32 %v949_v11, %v948_v61  ;;  %v2978_v11 = vld [vmem:[#allocation23_spill] sm:$0xff] }
 0x40e   :  { %v2990_v61 = vld [vmem:[#allocation11_spill] sm:$0xff] }
 0x40f   :  { %1794 = vtanh.f32 %v2592_v13 }
 0x41c   :  { %v1795_v63 = vpop.eup %1794 }
 0x41d   :  { %v952_v4 = vmul.f32 %v1795_v63, %v1793_v7  ;;  %v2991_v7 = vld [vmem:[#allocation8_spill] sm:$0xff]  ;;  %v2992_v63 = vmov 0.0  }
 0x41f   :  { %1023 = vmatmul.mubr.f32.vlgmr.msra.gmra.mxu0 %v952_v4  ;;  %1094 = vmatmul.mubr.f32.vlgmr.msra.gmra.mxu1 %v952_v4  ;;  %v2993_v4 = vld [vmem:[#allocation10_spill] sm:$0xff] }
 0x420   :  { %1134 = vmatpush1.msra.mxu0 %v2181_v60  ;;  %1205 = vmatpush1.msra.mxu1 %v2191_v62 }
 0x421   :  { %1135 = vmatprep.subr.mxu0 %v2166_v57  ;;  %1206 = vmatprep.subr.mxu1 %v2176_v59 }
 0x422   :  { %1136 = vmatpush1.msra.mxu0 %v2161_v56  ;;  %1207 = vmatpush1.msra.mxu1 %v2171_v58 }
 0x423   :  { %1137 = vmatprep.subr.mxu0 %v2146_v53  ;;  %1208 = vmatprep.subr.mxu1 %v2156_v55 }
 0x424   :  { %1138 = vmatpush1.msra.mxu0 %v2141_v52  ;;  %1209 = vmatpush1.msra.mxu1 %v2151_v54 }
 0x425   :  { %1139 = vmatprep.subr.mxu0 %v2126_v49  ;;  %1210 = vmatprep.subr.mxu1 %v2136_v51 }
 0x426   :  { %1140 = vmatpush1.msra.mxu0 %v2121_v48  ;;  %1211 = vmatpush1.msra.mxu1 %v2131_v50 }
 0x427   :  { %1141 = vmatprep.subr.mxu0 %v2106_v45  ;;  %1212 = vmatprep.subr.mxu1 %v2116_v47 }
 0x428   :  { %1142 = vmatpush1.msra.mxu0 %v2101_v44  ;;  %1213 = vmatpush1.msra.mxu1 %v2111_v46 }
 0x429   :  { %1143 = vmatprep.subr.mxu0 %v2919_v41  ;;  %1214 = vmatprep.subr.mxu1 %v2096_v43 }
 0x42a   :  { %1144 = vmatpush1.msra.mxu0 %v2081_v40  ;;  %1215 = vmatpush1.msra.mxu1 %v2091_v42 }
 0x42b   :  { %1145 = vmatprep.subr.mxu0 %v2066_v37  ;;  %1216 = vmatprep.subr.mxu1 %v2076_v39 }
 0x42c   :  { %1146 = vmatpush1.msra.mxu0 %v2061_v36  ;;  %1217 = vmatpush1.msra.mxu1 %v2071_v38 }
 0x42d   :  { %1147 = vmatprep.subr.mxu0 %v2046_v33  ;;  %1218 = vmatprep.subr.mxu1 %v2056_v35 }
 0x42e   :  { %1148 = vmatpush1.msra.mxu0 %v2041_v32  ;;  %1219 = vmatpush1.msra.mxu1 %v2051_v34 }
 0x42f   :  { %1149 = vmatprep.subr.mxu0 %v2026_v29  ;;  %1220 = vmatprep.subr.mxu1 %v2036_v31 }
 0x430   :  { %1150 = vmatpush1.msra.mxu0 %v2021_v28  ;;  %1221 = vmatpush1.msra.mxu1 %v2031_v30 }
 0x431   :  { %1151 = vmatprep.subr.mxu0 %v2006_v25  ;;  %1222 = vmatprep.subr.mxu1 %v2016_v27 }
 0x432   :  { %1152 = vmatpush1.msra.mxu0 %v2001_v24  ;;  %1223 = vmatpush1.msra.mxu1 %v2011_v26 }
 0x433   :  { %1153 = vmatprep.subr.mxu0 %v1986_v21  ;;  %1224 = vmatprep.subr.mxu1 %v1996_v23 }
 0x434   :  { %1154 = vmatpush1.msra.mxu0 %v1981_v20  ;;  %1225 = vmatpush1.msra.mxu1 %v1991_v22 }
 0x435   :  { %1155 = vmatprep.subr.mxu0 %v1966_v17  ;;  %1226 = vmatprep.subr.mxu1 %v1976_v19 }
 0x436   :  { %1156 = vmatpush1.msra.mxu0 %v1961_v16  ;;  %1227 = vmatpush1.msra.mxu1 %v1971_v18 }
 0x437   :  { %1157 = vmatprep.subr.mxu0 %v2977_v15  ;;  %1228 = vmatprep.subr.mxu1 %v2978_v11 }
 0x438   :  { %1158 = vmatpush1.msra.mxu0 %v2979_v10  ;;  %1229 = vmatpush1.msra.mxu1 %v2980_v5 }
 0x439   :  { %1159 = vmatprep.subr.mxu0 %v2981_v2  ;;  %1230 = vmatprep.subr.mxu1 %v2982_v14  ;;  %v1705_v14 = vld [vmem:[%s2851_s0 + $0x98] sm:$0xff] }
 0x43a   :  { %1160 = vmatpush1.msra.mxu0 %v2983_v6  ;;  %1231 = vmatpush1.msra.mxu1 %v2984_v12  ;;  %v2994_v12 = vld [vmem:[#allocation25_spill] sm:$0xff] }
 0x43b   :  { %1161 = vmatprep.subr.mxu0 %v2985_v1  ;;  %1232 = vmatprep.subr.mxu1 %v2986_v0  ;;  %v2995_v1 = vld [vmem:[#allocation26_spill] sm:$0xff] }
 0x43c   :  { %1162 = vmatpush1.msra.mxu0 %v2987_v3  ;;  %1233 = vmatpush1.msra.mxu1 %v2988_v9  ;;  %v1702_v9 = vld [vmem:[%s2851_s0 + $0x80] sm:$0xff] }
 0x43d   :  { %1163 = vmatprep.subr.mxu0 %v2989_v8  ;;  %1234 = vmatprep.subr.mxu1 %v2990_v61  ;;  %v1703_v61 = vld [vmem:[%s2851_s0 + $0x88] sm:$0xff] }
 0x43e   :  { %1164 = vmatpush1.msra.mxu0 %v2991_v7  ;;  %1197 = vmatprep.mubr.f32.mxu0 %v2992_v63 }
 0x43f   :  { %1235 = vmatpush1.msra.mxu1 %v2993_v4  ;;  %1268 = vmatprep.mubr.f32.mxu1 %v2992_v63 }
 0x440   :  { %1308 = vmatprep.subr.mxu0 %v2994_v12  ;;  %1379 = vmatprep.subr.mxu1 %v2995_v1  ;;  %v1704_v1 = vld [vmem:[%s2851_s0 + $0x90] sm:$0xff] }
 0x4df   :  { %v1024_v3 = vpop.f32.mrf.mxu0  ;;  %v1095_v12 = vpop.f32.mrf.mxu1 }
 0x4e0   :  { %v1100_v7 = vadd.f32 %v1702_v9, %v1024_v3  ;;  %v1102_v63 = vadd.f32 %v1704_v1, %v1095_v12 }
 0x4e1   :  { %v1026_v8 = vpop.f32.mrf.mxu0  ;;  %v1097_v2 = vpop.f32.mrf.mxu1 }
 0x4e2   :  { %v1706_v0 = vmul.f32 -1.442695, %v1100_v7  ;;  %v1101_v6 = vadd.f32 %v1703_v61, %v1026_v8  ;;  %v1708_v5 = vmul.f32 -1.442695, %v1102_v63  ;;  %v1103_v3 = vadd.f32 %v1705_v14, %v1097_v2  ;;  %v2998_v14 = vld [vmem:[#allocation20_spill] sm:$0xff]  ;;  %v2999_v63 = vld [vmem:[#allocation22_spill] sm:$0xff] }
 0x4e4   :  { %1796 = vpow2.f32 %v1706_v0  ;;  %v1707_v4 = vmul.f32 -1.442695, %v1101_v6 }
 0x4e6   :  { %1798 = vpow2.f32 %v1707_v4 }
 0x4e7   :  { %1800 = vpow2.f32 %v1708_v5 }
 0x4f1   :  { %v1797_v10 = vpop.eup %1796 }
 0x4f2   :  { %v1113_v9 = vadd.f32 1.0, %v1797_v10 }
 0x4f3   :  { %v1799_v7 = vpop.eup %1798 }
 0x4f4   :  { %1802 = vrcp.f32 %v1113_v9  ;;  %v1114_v6 = vadd.f32 1.0, %v1799_v7  ;;  %v1801_v0 = vpop.eup %1800  ;;  %v3001_v9 = vld [vmem:[#allocation19_spill] sm:$0xff]  ;;  %v3002_v7 = vld [vmem:[#allocation16_spill] sm:$0xff] }
 0x4f5   :  { %1804 = vtanh.f32 %v1103_v3  ;;  %v1115_v12 = vadd.f32 1.0, %v1801_v0  ;;  %v3000_v3 = vld [vmem:[#allocation17_spill] sm:$0xff] }
 0x4f6   :  { %1806 = vrcp.f32 %v1114_v6  ;;  %v3003_v6 = vld [vmem:[#allocation18_spill] sm:$0xff]  ;;  %v3004_v0 = vld [vmem:[#allocation13_spill] sm:$0xff] }
 0x4f7   :  { %1808 = vrcp.f32 %v1115_v12  ;;  %v3008_v12 = vld [vmem:[#allocation9_spill] sm:$0xff] }
 0x501   :  { %v1803_v8 = vpop.eup %1802 }
 0x502   :  { %v1805_v61 = vpop.eup %1804 }
 0x503   :  { %v1807_v4 = vpop.eup %1806  ;;  %v1124_v11 = vmul.f32 %v1805_v61, %v1803_v8  ;;  %v3005_v8 = vld [vmem:[#allocation15_spill] sm:$0xff]  ;;  %v3006_v61 = vld [vmem:[#allocation12_spill] sm:$0xff] }
 0x504   :  { %v1123_v1 = vmul.f32 %v1807_v4, %v2592_v13  ;;  %v1809_v10 = vpop.eup %1808  ;;  %v2996_v13 = vld [vmem:[#allocation21_spill] sm:$0xff]  ;;  %v3007_v4 = vld [vmem:[#allocation14_spill] sm:$0xff] }
 0x506   :  { %v2674_v15 = vadd.f32 %v1124_v11, %v1123_v1  ;;  %v2997_v11 = vld [vmem:[#allocation23_spill] sm:$0xff] }
 0x507   :  { %v3009_v1 = vld [vmem:[#allocation11_spill] sm:$0xff] }
 0x508   :  { %1810 = vtanh.f32 %v2674_v15 }
 0x515   :  { %v1811_v2 = vpop.eup %1810 }
 0x516   :  { %v1127_v5 = vmul.f32 %v1811_v2, %v1809_v10  ;;  %v3010_v10 = vld [vmem:[#allocation8_spill] sm:$0xff]  ;;  %v3011_v2 = vmov 0.0  }
 0x518   :  { %1198 = vmatmul.mubr.f32.vlgmr.msra.gmra.mxu0 %v1127_v5  ;;  %1269 = vmatmul.mubr.f32.vlgmr.msra.gmra.mxu1 %v1127_v5  ;;  %v3012_v5 = vld [vmem:[#allocation10_spill] sm:$0xff] }
 0x519   :  { %1309 = vmatpush1.msra.mxu0 %v2181_v60  ;;  %1380 = vmatpush1.msra.mxu1 %v2191_v62 }
 0x51a   :  { %1310 = vmatprep.subr.mxu0 %v2166_v57  ;;  %1381 = vmatprep.subr.mxu1 %v2176_v59 }
 0x51b   :  { %1311 = vmatpush1.msra.mxu0 %v2161_v56  ;;  %1382 = vmatpush1.msra.mxu1 %v2171_v58 }
 0x51c   :  { %1312 = vmatprep.subr.mxu0 %v2146_v53  ;;  %1383 = vmatprep.subr.mxu1 %v2156_v55 }
 0x51d   :  { %1313 = vmatpush1.msra.mxu0 %v2141_v52  ;;  %1384 = vmatpush1.msra.mxu1 %v2151_v54 }
 0x51e   :  { %1314 = vmatprep.subr.mxu0 %v2126_v49  ;;  %1385 = vmatprep.subr.mxu1 %v2136_v51 }
 0x51f   :  { %1315 = vmatpush1.msra.mxu0 %v2121_v48  ;;  %1386 = vmatpush1.msra.mxu1 %v2131_v50 }
 0x520   :  { %1316 = vmatprep.subr.mxu0 %v2106_v45  ;;  %1387 = vmatprep.subr.mxu1 %v2116_v47 }
 0x521   :  { %1317 = vmatpush1.msra.mxu0 %v2101_v44  ;;  %1388 = vmatpush1.msra.mxu1 %v2111_v46 }
 0x522   :  { %1318 = vmatprep.subr.mxu0 %v2919_v41  ;;  %1389 = vmatprep.subr.mxu1 %v2096_v43 }
 0x523   :  { %1319 = vmatpush1.msra.mxu0 %v2081_v40  ;;  %1390 = vmatpush1.msra.mxu1 %v2091_v42 }
 0x524   :  { %1320 = vmatprep.subr.mxu0 %v2066_v37  ;;  %1391 = vmatprep.subr.mxu1 %v2076_v39 }
 0x525   :  { %1321 = vmatpush1.msra.mxu0 %v2061_v36  ;;  %1392 = vmatpush1.msra.mxu1 %v2071_v38 }
 0x526   :  { %1322 = vmatprep.subr.mxu0 %v2046_v33  ;;  %1393 = vmatprep.subr.mxu1 %v2056_v35 }
 0x527   :  { %1323 = vmatpush1.msra.mxu0 %v2041_v32  ;;  %1394 = vmatpush1.msra.mxu1 %v2051_v34 }
 0x528   :  { %1324 = vmatprep.subr.mxu0 %v2026_v29  ;;  %1395 = vmatprep.subr.mxu1 %v2036_v31 }
 0x529   :  { %1325 = vmatpush1.msra.mxu0 %v2021_v28  ;;  %1396 = vmatpush1.msra.mxu1 %v2031_v30 }
 0x52a   :  { %1326 = vmatprep.subr.mxu0 %v2006_v25  ;;  %1397 = vmatprep.subr.mxu1 %v2016_v27 }
 0x52b   :  { %1327 = vmatpush1.msra.mxu0 %v2001_v24  ;;  %1398 = vmatpush1.msra.mxu1 %v2011_v26 }
 0x52c   :  { %1328 = vmatprep.subr.mxu0 %v1986_v21  ;;  %1399 = vmatprep.subr.mxu1 %v1996_v23 }
 0x52d   :  { %1329 = vmatpush1.msra.mxu0 %v1981_v20  ;;  %1400 = vmatpush1.msra.mxu1 %v1991_v22 }
 0x52e   :  { %1330 = vmatprep.subr.mxu0 %v1966_v17  ;;  %1401 = vmatprep.subr.mxu1 %v1976_v19 }
 0x52f   :  { %1331 = vmatpush1.msra.mxu0 %v1961_v16  ;;  %1402 = vmatpush1.msra.mxu1 %v1971_v18 }
 0x530   :  { %1332 = vmatprep.subr.mxu0 %v2996_v13  ;;  %1403 = vmatprep.subr.mxu1 %v2997_v11 }
 0x531   :  { %1333 = vmatpush1.msra.mxu0 %v2998_v14  ;;  %1404 = vmatpush1.msra.mxu1 %v2999_v63 }
 0x532   :  { %1334 = vmatprep.subr.mxu0 %v3000_v3  ;;  %1405 = vmatprep.subr.mxu1 %v3001_v9  ;;  %v1712_v9 = vld [vmem:[%s2851_s0 + $0xb8] sm:$0xff] }
 0x533   :  { %1335 = vmatpush1.msra.mxu0 %v3002_v7  ;;  %1406 = vmatpush1.msra.mxu1 %v3003_v6  ;;  %v3013_v6 = vld [vmem:[#allocation25_spill] sm:$0xff] }
 0x534   :  { %1336 = vmatprep.subr.mxu0 %v3004_v0  ;;  %1407 = vmatprep.subr.mxu1 %v3005_v8  ;;  %v3014_v0 = vld [vmem:[#allocation26_spill] sm:$0xff] }
 0x535   :  { %1337 = vmatpush1.msra.mxu0 %v3006_v61  ;;  %1408 = vmatpush1.msra.mxu1 %v3007_v4  ;;  %v1709_v4 = vld [vmem:[%s2851_s0 + $0xa0] sm:$0xff] }
 0x536   :  { %1338 = vmatprep.subr.mxu0 %v3008_v12  ;;  %1409 = vmatprep.subr.mxu1 %v3009_v1  ;;  %v1710_v1 = vld [vmem:[%s2851_s0 + $0xa8] sm:$0xff] }
 0x537   :  { %1339 = vmatpush1.msra.mxu0 %v3010_v10  ;;  %1372 = vmatprep.mubr.f32.mxu0 %v3011_v2 }
 0x538   :  { %1410 = vmatpush1.msra.mxu1 %v3012_v5  ;;  %1443 = vmatprep.mubr.f32.mxu1 %v3011_v2 }
 0x539   :  { %1483 = vmatprep.subr.mxu0 %v3013_v6  ;;  %1554 = vmatprep.subr.mxu1 %v3014_v0  ;;  %v1711_v6 = vld [vmem:[%s2851_s0 + $0xb0] sm:$0xff] }
 0x5d8   :  { %v1199_v61 = vpop.f32.mrf.mxu0  ;;  %v1270_v0 = vpop.f32.mrf.mxu1 }
 0x5d9   :  { %v1275_v10 = vadd.f32 %v1709_v4, %v1199_v61  ;;  %v1277_v2 = vadd.f32 %v1711_v6, %v1270_v0 }
 0x5da   :  { %v1201_v12 = vpop.f32.mrf.mxu0  ;;  %v1272_v3 = vpop.f32.mrf.mxu1 }
 0x5db   :  { %v1713_v8 = vmul.f32 -1.442695, %v1275_v10  ;;  %v1276_v7 = vadd.f32 %v1710_v1, %v1201_v12  ;;  %v1715_v63 = vmul.f32 -1.442695, %v1277_v2  ;;  %v1278_v61 = vadd.f32 %v1712_v9, %v1272_v3  ;;  %v1724_v2 = vld [vmem:[%s2851_s0 + $0xe8] sm:$0xff] }
 0x5dd   :  { %1812 = vpow2.f32 %v1713_v8  ;;  %v1714_v5 = vmul.f32 -1.442695, %v1276_v7 }
 0x5df   :  { %1814 = vpow2.f32 %v1714_v5 }
 0x5e0   :  { %1816 = vpow2.f32 %v1715_v63 }
 0x5ea   :  { %v1813_v14 = vpop.eup %1812 }
 0x5eb   :  { %v1288_v4 = vadd.f32 1.0, %v1813_v14 }
 0x5ec   :  { %v1815_v10 = vpop.eup %1814 }
 0x5ed   :  { %1818 = vrcp.f32 %v1288_v4  ;;  %v1289_v7 = vadd.f32 1.0, %v1815_v10  ;;  %v1817_v8 = vpop.eup %1816 }
 0x5ee   :  { %1820 = vtanh.f32 %v1278_v61  ;;  %v1290_v6 = vadd.f32 1.0, %v1817_v8  ;;  %v1725_v8 = vld [vmem:[%s2851_s0 + $0xf0] sm:$0xff] }
 0x5ef   :  { %1822 = vrcp.f32 %v1289_v7 }
 0x5f0   :  { %1824 = vrcp.f32 %v1290_v6 }
 0x5fa   :  { %v1819_v12 = vpop.eup %1818 }
 0x5fb   :  { %v1821_v1 = vpop.eup %1820 }
 0x5fc   :  { %v1823_v5 = vpop.eup %1822  ;;  %v1299_v11 = vmul.f32 %v1821_v1, %v1819_v12 }
 0x5fd   :  { %v1298_v0 = vmul.f32 %v1823_v5, %v2674_v15  ;;  %v1825_v14 = vpop.eup %1824  ;;  %v1726_v5 = vld [vmem:[%s2851_s0 + $0xf8] sm:$0xff] }
 0x5ff   :  { %v2756_v13 = vadd.f32 %v1299_v11, %v1298_v0  ;;  %v1723_v11 = vld [vmem:[%s2851_s0 + $0xe0] sm:$0xff] }
 0x601   :  { %1826 = vtanh.f32 %v2756_v13 }
 0x60e   :  { %v1827_v3 = vpop.eup %1826 }
 0x60f   :  { %v1302_v63 = vmul.f32 %v1827_v3, %v1825_v14 }
 0x611   :  { %1373 = vmatmul.mubr.f32.vlgmr.msra.gmra.mxu0 %v1302_v63  ;;  %1444 = vmatmul.mubr.f32.vlgmr.msra.gmra.mxu1 %v1302_v63 }
 0x612   :  { %1484 = vmatpush1.msra.mxu0 %v2181_v60  ;;  %1555 = vmatpush1.msra.mxu1 %v2191_v62 }
 0x613   :  { %1485 = vmatprep.subr.mxu0 %v2166_v57  ;;  %1556 = vmatprep.subr.mxu1 %v2176_v59 }
 0x614   :  { %1486 = vmatpush1.msra.mxu0 %v2161_v56  ;;  %1557 = vmatpush1.msra.mxu1 %v2171_v58 }
 0x615   :  { %1487 = vmatprep.subr.mxu0 %v2146_v53  ;;  %1558 = vmatprep.subr.mxu1 %v2156_v55 }
 0x616   :  { %1488 = vmatpush1.msra.mxu0 %v2141_v52  ;;  %1559 = vmatpush1.msra.mxu1 %v2151_v54 }
 0x617   :  { %1489 = vmatprep.subr.mxu0 %v2126_v49  ;;  %1560 = vmatprep.subr.mxu1 %v2136_v51 }
 0x618   :  { %1490 = vmatpush1.msra.mxu0 %v2121_v48  ;;  %1561 = vmatpush1.msra.mxu1 %v2131_v50 }
 0x619   :  { %1491 = vmatprep.subr.mxu0 %v2106_v45  ;;  %1562 = vmatprep.subr.mxu1 %v2116_v47 }
 0x61a   :  { %1492 = vmatpush1.msra.mxu0 %v2101_v44  ;;  %1563 = vmatpush1.msra.mxu1 %v2111_v46  ;;  %v1719_v44 = vld [vmem:[%s2851_s0 + $0xd8] sm:$0xff] }
 0x61b   :  { %1493 = vmatprep.subr.mxu0 %v2919_v41  ;;  %1564 = vmatprep.subr.mxu1 %v2096_v43  ;;  %v1718_v41 = vld [vmem:[%s2851_s0 + $0xd0] sm:$0xff] }
 0x61c   :  { %1494 = vmatpush1.msra.mxu0 %v2081_v40  ;;  %1565 = vmatpush1.msra.mxu1 %v2091_v42 }
 0x61d   :  { %1495 = vmatprep.subr.mxu0 %v2066_v37  ;;  %1566 = vmatprep.subr.mxu1 %v2076_v39 }
 0x61e   :  { %1496 = vmatpush1.msra.mxu0 %v2061_v36  ;;  %1567 = vmatpush1.msra.mxu1 %v2071_v38 }
 0x61f   :  { %1497 = vmatprep.subr.mxu0 %v2046_v33  ;;  %1568 = vmatprep.subr.mxu1 %v2056_v35  ;;  %v1716_v33 = vld [vmem:[%s2851_s0 + $0xc0] sm:$0xff]  ;;  %v1717_v35 = vld [vmem:[%s2851_s0 + $0xc8] sm:$0xff] }
 0x620   :  { %1498 = vmatpush1.msra.mxu0 %v2041_v32  ;;  %1569 = vmatpush1.msra.mxu1 %v2051_v34  ;;  %v3031_v32 = vld [vmem:[#allocation10_spill] sm:$0xff] }
 0x621   :  { %1499 = vmatprep.subr.mxu0 %v2026_v29  ;;  %1570 = vmatprep.subr.mxu1 %v2036_v31  ;;  %v3028_v29 = vld [vmem:[#allocation11_spill] sm:$0xff]  ;;  %v3030_v31 = vmov 0.0  }
 0x622   :  { %1500 = vmatpush1.msra.mxu0 %v2021_v28  ;;  %1571 = vmatpush1.msra.mxu1 %v2031_v30  ;;  %v3027_v28 = vld [vmem:[#allocation9_spill] sm:$0xff]  ;;  %v3029_v30 = vld [vmem:[#allocation8_spill] sm:$0xff] }
 0x623   :  { %1501 = vmatprep.subr.mxu0 %v2006_v25  ;;  %1572 = vmatprep.subr.mxu1 %v2016_v27  ;;  %v3015_v25 = vld [vmem:[#allocation21_spill] sm:$0xff]  ;;  %v3026_v27 = vld [vmem:[#allocation14_spill] sm:$0xff] }
 0x624   :  { %1502 = vmatpush1.msra.mxu0 %v2001_v24  ;;  %1573 = vmatpush1.msra.mxu1 %v2011_v26  ;;  %v3016_v24 = vld [vmem:[#allocation23_spill] sm:$0xff]  ;;  %v3017_v26 = vld [vmem:[#allocation20_spill] sm:$0xff] }
 0x625   :  { %1503 = vmatprep.subr.mxu0 %v1986_v21  ;;  %1574 = vmatprep.subr.mxu1 %v1996_v23  ;;  %v3018_v21 = vld [vmem:[#allocation22_spill] sm:$0xff]  ;;  %v3019_v23 = vld [vmem:[#allocation17_spill] sm:$0xff] }
 0x626   :  { %1504 = vmatpush1.msra.mxu0 %v1981_v20  ;;  %1575 = vmatpush1.msra.mxu1 %v1991_v22  ;;  %v3020_v20 = vld [vmem:[#allocation19_spill] sm:$0xff]  ;;  %v3021_v22 = vld [vmem:[#allocation16_spill] sm:$0xff] }
 0x627   :  { %1505 = vmatprep.subr.mxu0 %v1966_v17  ;;  %1576 = vmatprep.subr.mxu1 %v1976_v19  ;;  %v3022_v17 = vld [vmem:[#allocation18_spill] sm:$0xff]  ;;  %v3023_v19 = vld [vmem:[#allocation13_spill] sm:$0xff] }
 0x628   :  { %1506 = vmatpush1.msra.mxu0 %v1961_v16  ;;  %1577 = vmatpush1.msra.mxu1 %v1971_v18  ;;  %v3024_v16 = vld [vmem:[#allocation15_spill] sm:$0xff]  ;;  %v3025_v18 = vld [vmem:[#allocation12_spill] sm:$0xff] }
 0x629   :  { %1507 = vmatprep.subr.mxu0 %v3015_v25  ;;  %1578 = vmatprep.subr.mxu1 %v3016_v24 }
 0x62a   :  { %1508 = vmatpush1.msra.mxu0 %v3017_v26  ;;  %1579 = vmatpush1.msra.mxu1 %v3018_v21 }
 0x62b   :  { %1509 = vmatprep.subr.mxu0 %v3019_v23  ;;  %1580 = vmatprep.subr.mxu1 %v3020_v20 }
 0x62c   :  { %1510 = vmatpush1.msra.mxu0 %v3021_v22  ;;  %1581 = vmatpush1.msra.mxu1 %v3022_v17 }
 0x62d   :  { %1511 = vmatprep.subr.mxu0 %v3023_v19  ;;  %1582 = vmatprep.subr.mxu1 %v3024_v16 }
 0x62e   :  { %1512 = vmatpush1.msra.mxu0 %v3025_v18  ;;  %1583 = vmatpush1.msra.mxu1 %v3026_v27 }
 0x62f   :  { %1513 = vmatprep.subr.mxu0 %v3027_v28  ;;  %1584 = vmatprep.subr.mxu1 %v3028_v29 }
 0x630   :  { %1514 = vmatpush1.msra.mxu0 %v3029_v30  ;;  %1547 = vmatprep.mubr.f32.mxu0 %v3030_v31 }
 0x631   :  { %1585 = vmatpush1.msra.mxu1 %v3031_v32  ;;  %1618 = vmatprep.mubr.f32.mxu1 %v3030_v31 }
 0x6d1   :  { %v1374_v34 = vpop.f32.mrf.mxu0  ;;  %v1445_v42 = vpop.f32.mrf.mxu1 }
 0x6d2   :  { %v1450_v36 = vadd.f32 %v1716_v33, %v1374_v34  ;;  %v1452_v43 = vadd.f32 %v1718_v41, %v1445_v42 }
 0x6d3   :  { %v1376_v37 = vpop.f32.mrf.mxu0  ;;  %v1447_v45 = vpop.f32.mrf.mxu1 }
 0x6d4   :  { %v1720_v38 = vmul.f32 -1.442695, %v1450_v36  ;;  %v1451_v39 = vadd.f32 %v1717_v35, %v1376_v37  ;;  %v1722_v46 = vmul.f32 -1.442695, %v1452_v43  ;;  %v1453_v48 = vadd.f32 %v1719_v44, %v1447_v45 }
 0x6d6   :  { %1828 = vpow2.f32 %v1720_v38  ;;  %v1721_v40 = vmul.f32 -1.442695, %v1451_v39 }
 0x6d8   :  { %1830 = vpow2.f32 %v1721_v40 }
 0x6d9   :  { %1832 = vpow2.f32 %v1722_v46 }
 0x6e3   :  { %v1829_v47 = vpop.eup %1828 }
 0x6e4   :  { %v1463_v49 = vadd.f32 1.0, %v1829_v47 }
 0x6e5   :  { %v1831_v50 = vpop.eup %1830 }
 0x6e6   :  { %1834 = vrcp.f32 %v1463_v49  ;;  %v1464_v51 = vadd.f32 1.0, %v1831_v50  ;;  %v1833_v52 = vpop.eup %1832 }
 0x6e7   :  { %1836 = vtanh.f32 %v1453_v48  ;;  %v1465_v56 = vadd.f32 1.0, %v1833_v52 }
 0x6e8   :  { %1838 = vrcp.f32 %v1464_v51 }
 0x6e9   :  { %1840 = vrcp.f32 %v1465_v56 }
 0x6f3   :  { %v1835_v53 = vpop.eup %1834 }
 0x6f4   :  { %v1837_v54 = vpop.eup %1836 }
 0x6f5   :  { %v1839_v55 = vpop.eup %1838  ;;  %v1474_v58 = vmul.f32 %v1837_v54, %v1835_v53 }
 0x6f6   :  { %v1473_v57 = vmul.f32 %v1839_v55, %v2756_v13  ;;  %v1841_v60 = vpop.eup %1840 }
 0x6f8   :  { %v1475_v59 = vadd.f32 %v1474_v58, %v1473_v57 }
 0x6fa   :  { %1842 = vtanh.f32 %v1475_v59 }
 0x707   :  { %v1843_v62 = vpop.eup %1842 }
 0x708   :  { %v1477_v15 = vmul.f32 %v1843_v62, %v1841_v60 }
 0x70a   :  { %1548 = vmatmul.mubr.f32.vlgmr.msra.gmra.mxu0 %v1477_v15  ;;  %1619 = vmatmul.mubr.f32.vlgmr.msra.gmra.mxu1 %v1477_v15 }
 0x7ca   :  { %v1549_v9 = vpop.f32.mrf.mxu0  ;;  %v1620_v12 = vpop.f32.mrf.mxu1 }
 0x7cb   :  { %v1625_v61 = vadd.f32 %v1723_v11, %v1549_v9  ;;  %v1627_v1 = vadd.f32 %v1725_v8, %v1620_v12 }
 0x7cc   :  { %v1551_v13 = vpop.f32.mrf.mxu0  ;;  %v1622_v6 = vpop.f32.mrf.mxu1 }
 0x7cd   :  { %v1727_v4 = vmul.f32 -1.442695, %v1625_v61  ;;  %v1626_v10 = vadd.f32 %v1724_v2, %v1551_v13  ;;  %v1729_v0 = vmul.f32 -1.442695, %v1627_v1  ;;  %v1628_v3 = vadd.f32 %v1726_v5, %v1622_v6 }
 0x7cf   :  { %1844 = vpow2.f32 %v1727_v4  ;;  %v1728_v7 = vmul.f32 -1.442695, %v1626_v10 }
 0x7d1   :  { %1846 = vpow2.f32 %v1728_v7 }
 0x7d2   :  { %1848 = vpow2.f32 %v1729_v0 }
 0x7dc   :  { %v1845_v14 = vpop.eup %1844 }
 0x7dd   :  { %v1638_v63 = vadd.f32 1.0, %v1845_v14 }
 0x7de   :  { %v1847_v25 = vpop.eup %1846 }
 0x7df   :  { %1850 = vrcp.f32 %v1638_v63  ;;  %v1639_v24 = vadd.f32 1.0, %v1847_v25  ;;  %v1849_v26 = vpop.eup %1848 }
 0x7e0   :  { %1852 = vtanh.f32 %v1628_v3  ;;  %v1640_v22 = vadd.f32 1.0, %v1849_v26 }
 0x7e1   :  { %1854 = vrcp.f32 %v1639_v24 }
 0x7e2   :  { %1856 = vrcp.f32 %v1640_v22 }
 0x7ec   :  { %v1851_v21 = vpop.eup %1850 }
 0x7ed   :  { %v1853_v23 = vpop.eup %1852 }
 0x7ee   :  { %v1855_v20 = vpop.eup %1854  ;;  %v1649_v19 = vmul.f32 %v1853_v23, %v1851_v21 }
 0x7ef   :  { %v1648_v17 = vmul.f32 %v1855_v20, %v1475_v59  ;;  %v1857_v18 = vpop.eup %1856 }
 0x7f1   :  { %v1650_v16 = vadd.f32 %v1649_v19, %v1648_v17 }
 0x7f3   :  { %1858 = vtanh.f32 %v1650_v16 }
 0x800   :  { %v1859_v27 = vpop.eup %1858 }
 0x801   :  { %v1652_v28 = vmul.f32 %v1859_v27, %v1857_v18 }
 0x803   :  { %1659 = vst [vmem:[%s2853_s2] sm:$0xff] %v1652_v28 }
 0x804   :  { %1664 = vsyncmov [#allocation5] }
 0x807   :  { %s1665_s3 = vpop.sfrf %1664 }
 0x808   :  { %p1730_p0 = scmp.ne.s32.totalorder %s1665_s3, 0 }
 0x80a   :  { %1669 = shalt.err (%p1730_p0)  }

</bundles_post_ra>
